<compile_context>
chip_gen: v7x
topology: tpu7x:2x2x1
jax: 0.10.0
libtpu: 0.0.40
codegen_flags: <defaults>
</compile_context>

<pallas_src>
import functools

import jax
import jax.numpy as jnp
import numpy as np
from jax.experimental import pallas as pl
from jax.experimental.pallas import tpu as pltpu

_BN_EPS = 0.0  # nn.BatchNorm2d(F1, False): second positional arg is eps -> 0.0


# --------------------------------------------------------------------------
# Weight preprocessing (pure JAX, wrapper side)
# --------------------------------------------------------------------------
def _apply_max_norm(w2, max_norm, eps=1e-9):
    """DepthwiseConv2d.scale_norm: clamp per-filter L2 norm over Chans."""
    if max_norm is None:
        return w2
    norm = jnp.linalg.norm(w2, axis=1, keepdims=True)
    desired = jnp.clip(norm, 0.0, max_norm)
    return w2 * desired / (eps + norm)


def _bn_fold(bn, eps=_BN_EPS):
    scale = bn["gamma"] / jnp.sqrt(bn["var"] + eps)
    shift = bn["beta"] - bn["mean"] * scale
    return scale, shift


def _fold_params(params, chans, depthwise_max_norm):
    """Fold conv1+BN1+conv2+BN2 and sepconv+BN3 into two matmul weights."""
    f32 = jnp.float32
    w1 = params["conv1_w"].astype(f32)          # (F1, K1)
    w2 = params["conv2_w"].astype(f32)          # (D*F1, Chans)
    dw = params["sep_dw_w"].astype(f32)         # (D*F1, K2)
    pw = params["sep_pw_w"].astype(f32)         # (F2, D*F1)
    f1, k1 = w1.shape
    df1 = w2.shape[0]
    d = df1 // f1
    f2 = pw.shape[0]
    k2 = dw.shape[1]

    s1, d1 = _bn_fold(params["bn1"])            # (F1,)
    s2, d2 = _bn_fold(params["bn2"])            # (D*F1,)
    s3, d3 = _bn_fold(params["bn3"])            # (F2,)

    w2n = _apply_max_norm(w2, depthwise_max_norm)       # (D*F1, Chans)
    grp = jnp.arange(df1) // d                          # group (F1) per out ch
    w1g = w1[grp]                                       # (D*F1, K1)

    # W12[o, k*Chans + c] = s2[o] * s1[g(o)] * w1[g(o), k] * w2n[o, c]
    w12 = (s2[:, None, None] * s1[grp][:, None, None]
           * w1g[:, :, None] * w2n[:, None, :])          # (D*F1, K1, Chans)
    w12 = w12.reshape(df1, k1 * chans)
    bias_a = (s2 * s1[grp] * d1[grp] * jnp.sum(w2n, axis=1) + d2)[:, None]

    # Wsep[f, k*D*F1 + o] = s3[f] * pw[f, o] * dw[o, k]
    wsep = (s3[:, None, None] * dw.T[None, :, :] * pw[:, None, :])  # (F2,K2,DF1)
    wsep = wsep.reshape(f2, k2 * df1)
    bias_c = d3[:, None]

    return w12, bias_a, wsep, bias_c, (f1, d, df1, f2, k1, k2)


# --------------------------------------------------------------------------
# Pallas kernel: one batch block per grid step, 4 matmuls total
# --------------------------------------------------------------------------
def _eegnet_kernel(xp_ref, w12_ref, ba_ref, wsep_ref, bc_ref, pm1_ref, pm2_ref,
                   out_ref, *, kern1, kern2, t_len, nb_block, alpha):
    f32 = jnp.float32
    w12 = w12_ref[...]          # (D*F1, K1*Chans)        resident
    ba = ba_ref[...]            # (D*F1, 1)
    wsep = wsep_ref[...]        # (F2, K2*D*F1)
    bc = bc_ref[...]            # (F2, 1)
    pm1 = pm1_ref[...]          # (Nb*T, Nb*T2pad)  pool1 + sep-conv pad insert
    pm2 = pm2_ref[...]          # (L2, Nb*T3)       pool2 + garbage-lane drop

    def elu(v):
        return jnp.where(v > 0, v,
                         alpha * (jnp.exp(jnp.minimum(v, 0.0)) - 1.0))

    # ---- Stage A: conv1 + BN1 + depthwise conv2 + BN2 for the WHOLE batch
    # block as ONE matmul.  im2col: taps stacked on sublanes (row = k*C + c),
    # batch elements stacked on lanes (lane = i*T + t).
    cols = []
    for i in range(nb_block):                            # small, unrolled
        xb = xp_ref[i].astype(f32)                       # (Chans, T + K1 - 1)
        cols.append(jnp.concatenate(
            [xb[:, k:k + t_len] for k in range(kern1)], axis=0))  # (K1*C, T)
    xs = jnp.concatenate(cols, axis=-1)                  # (K1*C, Nb*T)
    za = elu(jnp.dot(w12, xs, preferred_element_type=f32) + ba)   # (DF1, Nb*T)

    # ---- AvgPool2d((1, pool1)) + zero-pad insertion for the 'same' separable
    # conv, as one matmul against the resident block-diagonal matrix.
    p2 = jnp.dot(za, pm1, preferred_element_type=f32)    # (DF1, Nb*T2pad)

    # ---- Separable conv (depthwise temporal + pointwise) + BN3 as ONE
    # matmul (row = k*D*F1 + o).  Cross-segment lanes are garbage and get
    # dropped by pm2 below.
    t2pad = pm1.shape[1] // nb_block
    l2 = nb_block * t2pad - (kern2 - 1)
    p2s = jnp.concatenate([p2[:, k:k + l2] for k in range(kern2)],
                          axis=0)                        # (K2*DF1, L2)
    zc = elu(jnp.dot(wsep, p2s, preferred_element_type=f32) + bc)  # (F2, L2)

    # ---- AvgPool2d((1, pool2)); single lane-concatenated store for the block.
    out_ref[0] = jnp.dot(zc, pm2, preferred_element_type=f32).astype(out_ref.dtype)


# --------------------------------------------------------------------------
# Wrapper
# --------------------------------------------------------------------------
def eegnet_encoder_forward(x, params, *, kern_length=64, sep_kernel=16,
                           pool1=4, pool2=8, elu_alpha=1.0,
                           depthwise_max_norm=1.0, batch_block=4):
    """Pallas forward of EEGNetEncoder.  x: (B, Chans, Samples) float32."""
    B, chans, samples = x.shape
    w12, bias_a, wsep, bias_c, dims = _fold_params(params, chans,
                                                   depthwise_max_norm)
    _, _, df1, f2, k1, k2 = dims
    assert k1 == kern_length and k2 == sep_kernel
    f32 = jnp.float32

    t = samples
    t2 = t // pool1
    t3 = t2 // pool2
    left1 = (kern_length - 1) // 2
    right1 = kern_length - 1 - left1
    left2 = (sep_kernel - 1) // 2
    t2pad = t2 + sep_kernel - 1
    t_pad = t + kern_length - 1

    xp = jnp.pad(x.astype(f32), ((0, 0), (0, 0), (left1, right1)))

    nb = -(-B // batch_block)
    b_pad = nb * batch_block
    if b_pad != B:
        xp = jnp.pad(xp, ((0, b_pad - B), (0, 0), (0, 0)))

    # Pool-1 matrix: per-segment (T, T2pad) averaging matrix with zero columns
    # at the separable-conv 'same' padding positions; block-diagonal over the
    # batch block.  Built once, resident in the kernel.
    m1 = ((jnp.arange(t)[:, None] // pool1)
          == jnp.arange(t2)[None, :]).astype(f32) / pool1          # (T, T2)
    m1p = jnp.zeros((t, t2pad), f32).at[:, left2:left2 + t2].set(m1)
    pm1 = jnp.kron(jnp.eye(batch_block, dtype=f32), m1p)  # (Nb*T, Nb*T2pad)

    # Pool-2 matrix: per-segment (T2pad, T3) averaging matrix (valid rows only)
    # block-diagonal over the batch block, truncated to the L2 conv-output
    # lanes; zero rows drop the cross-segment garbage lanes.
    l2 = batch_block * t2pad - (sep_kernel - 1)
    m2 = ((jnp.arange(t2)[:, None] // pool2)
          == jnp.arange(t3)[None, :]).astype(f32) / pool2          # (T2, T3)
    m2e = jnp.zeros((t2pad, t3), f32).at[:t2, :].set(m2)
    pm2 = jnp.kron(jnp.eye(batch_block, dtype=f32), m2e)[:l2]      # (L2, Nb*T3)

    kernel = functools.partial(_eegnet_kernel, kern1=kern_length,
                               kern2=sep_kernel, t_len=t,
                               nb_block=batch_block, alpha=float(elu_alpha))

    grid_spec = pltpu.PrefetchScalarGridSpec(
        num_scalar_prefetch=0,
        grid=(nb,),
        in_specs=[
            pl.BlockSpec((batch_block, chans, t_pad), lambda b: (b, 0, 0)),
            pl.BlockSpec(w12.shape, lambda b: (0, 0)),
            pl.BlockSpec(bias_a.shape, lambda b: (0, 0)),
            pl.BlockSpec(wsep.shape, lambda b: (0, 0)),
            pl.BlockSpec(bias_c.shape, lambda b: (0, 0)),
            pl.BlockSpec(pm1.shape, lambda b: (0, 0)),
            pl.BlockSpec(pm2.shape, lambda b: (0, 0)),
        ],
        out_specs=pl.BlockSpec((1, f2, batch_block * t3), lambda b: (b, 0, 0)),
    )
    out = pl.pallas_call(
        kernel,
        out_shape=jax.ShapeDtypeStruct((nb, f2, batch_block * t3), f32),
        grid_spec=grid_spec,
        compiler_params=pltpu.CompilerParams(
            dimension_semantics=("parallel",)),
    )(xp, w12, bias_a, wsep, bias_c, pm1, pm2)

    # Un-concatenate batch block from lanes; flatten like nn.Flatten on
    # PyTorch's (B, F2, 1, T3).
    out = out.reshape(nb, f2, batch_block, t3).transpose(0, 2, 1, 3)
    return out.reshape(b_pad, f2 * t3)[:B]


# --------------------------------------------------------------------------
# Synthetic parameters + plain-JAX reference (layer by layer)
# --------------------------------------------------------------------------
def init_params(key, chans, *, f1=8, d=2, f2=16, kern_length=64, sep_kernel=16):
    keys = jax.random.split(key, 7)
    s = 0.1
    df1 = f1 * d

    def bn(k, n):
        kg, kb, km, kv = jax.random.split(k, 4)
        return {"gamma": 1.0 + 0.1 * jax.random.normal(kg, (n,), jnp.float32),
                "beta": 0.1 * jax.random.normal(kb, (n,), jnp.float32),
                "mean": 0.1 * jax.random.normal(km, (n,), jnp.float32),
                "var": 1.0 + 0.5 * jax.random.uniform(kv, (n,), jnp.float32)}

    return {
        # conv1.weight (F1,1,1,K)       -> (F1, K)
        "conv1_w": s * jax.random.normal(keys[0], (f1, kern_length), jnp.float32),
        # conv2.weight (D*F1,1,Chans,1) -> (D*F1, Chans)
        "conv2_w": s * jax.random.normal(keys[1], (df1, chans), jnp.float32),
        # sepconv depthwise (D*F1,1,1,K2) -> (D*F1, K2)
        "sep_dw_w": s * jax.random.normal(keys[2], (df1, sep_kernel), jnp.float32),
        # sepconv pointwise (F2,D*F1,1,1) -> (F2, D*F1)
        "sep_pw_w": s * jax.random.normal(keys[3], (f2, df1), jnp.float32),
        "bn1": bn(keys[4], f1),
        "bn2": bn(keys[5], df1),
        "bn3": bn(keys[6], f2),
    }


def reference_forward(x, params, *, kern_length, sep_kernel, pool1, pool2,
                      elu_alpha=1.0, depthwise_max_norm=1.0):
    """Plain-JAX EEGNetEncoder forward (inference mode), layer by layer."""
    B, C, T = x.shape
    x = x.astype(jnp.float32)
    w1 = params["conv1_w"]
    w2 = _apply_max_norm(params["conv2_w"], depthwise_max_norm)
    dw = params["sep_dw_w"]
    pw = params["sep_pw_w"]
    f1 = w1.shape[0]
    df1 = w2.shape[0]
    d = df1 // f1
    f2 = pw.shape[0]

    def bn(y, p, axis=1):
        s = p["gamma"] / jnp.sqrt(p["var"] + _BN_EPS)
        sh = [1] * y.ndim
        sh[axis] = -1
        return y * s.reshape(sh) + (p["beta"] - p["mean"] * s).reshape(sh)

    def elu(y):
        return jnp.where(y > 0, y, elu_alpha * (jnp.exp(y) - 1.0))

    # conv1: (1 -> F1), kernel (1, K1), padding 'same' (PyTorch convention).
    left1 = (kern_length - 1) // 2
    xp = jnp.pad(x, ((0, 0), (0, 0), (left1, kern_length - 1 - left1)))
    y1 = sum(w1[None, :, None, None, k] * xp[:, None, :, k:k + T]
             for k in range(kern_length))                    # (B, F1, C, T)
    y1 = bn(y1, params["bn1"], axis=1)

    # conv2: depthwise across channels, 'valid' -> squeeze spatial dim.
    grp = jnp.arange(df1) // d
    z2 = jnp.einsum("oc,boct->bot", w2, y1[:, grp])          # (B, D*F1, T)
    z2 = elu(bn(z2, params["bn2"], axis=1))

    t2 = T // pool1
    p2 = z2[..., :t2 * pool1].reshape(B, df1, t2, pool1).mean(-1)

    # separable conv: depthwise temporal ('same') + pointwise 1x1.
    left2 = (sep_kernel - 1) // 2
    p2p = jnp.pad(p2, ((0, 0), (0, 0), (left2, sep_kernel - 1 - left2)))
    y3 = sum(dw[None, :, k, None] * p2p[..., k:k + t2]
             for k in range(sep_kernel))                     # (B, D*F1, T2)
    z3 = jnp.einsum("fo,bot->bft", pw, y3)                   # (B, F2, T2)
    z3 = elu(bn(z3, params["bn3"], axis=1))

    t3 = t2 // pool2
    p3 = z3[..., :t3 * pool2].reshape(B, f2, t3, pool2).mean(-1)
    return p3.reshape(B, -1)


if __name__ == "__main__":
    B, chans, samples = 8, 8, 128
    kern_length, sep_kernel = 16, 16
    pool1, pool2 = 4, 8
    f1, d, f2 = 8, 2, 16

    key = jax.random.PRNGKey(0)
    kx, kp = jax.random.split(key)
    x = jax.random.normal(kx, (B, chans, samples), jnp.float32)
    params = init_params(kp, chans, f1=f1, d=d, f2=f2,
                         kern_length=kern_length, sep_kernel=sep_kernel)

    out = eegnet_encoder_forward(
        x, params, kern_length=kern_length, sep_kernel=sep_kernel,
        pool1=pool1, pool2=pool2, elu_alpha=1.0, depthwise_max_norm=1.0,
        batch_block=4)
    out = jax.block_until_ready(out)

    t3 = samples // pool1 // pool2
    assert out.shape == (B, f2 * t3), out.shape

    ref = reference_forward(
        x, params, kern_length=kern_length, sep_kernel=sep_kernel,
        pool1=pool1, pool2=pool2, elu_alpha=1.0, depthwise_max_norm=1.0)
    np.testing.assert_allclose(np.asarray(out), np.asarray(ref),
                               rtol=2e-2, atol=2e-3)
    print("KERNEL_OK")
</pallas_src>

<mosaic_0001>
module attributes {stable_mosaic.version = 11 : i64} {
  func.func @_eegnet_kernel(%arg0: i32, %arg1: memref<4x8x143xf32, #tpu.memory_space<vmem>>, %arg2: memref<16x128xf32, #tpu.memory_space<vmem>>, %arg3: memref<16x1xf32, #tpu.memory_space<vmem>>, %arg4: memref<16x256xf32, #tpu.memory_space<vmem>>, %arg5: memref<16x1xf32, #tpu.memory_space<vmem>>, %arg6: memref<512x188xf32, #tpu.memory_space<vmem>>, %arg7: memref<173x16xf32, #tpu.memory_space<vmem>>, %arg8: memref<1x16x16xf32, #tpu.memory_space<vmem>>) attributes {dimension_semantics = [#tpu.dimension_semantics<parallel>], iteration_bounds = array<i64: 2>, scalar_prefetch = 0 : i64, scratch_operands = 0 : i64, tpu.core_type = #tpu.core_type<tc>, window_params = [{transform_indices = @transform_0, window_bounds = array<i64: 4, 8, 143>}, {pipeline_mode = #tpu.pipeline_mode<synchronous>, transform_indices = @transform_1, window_bounds = array<i64: 16, 128>}, {pipeline_mode = #tpu.pipeline_mode<synchronous>, transform_indices = @transform_2, window_bounds = array<i64: 16, 1>}, {pipeline_mode = #tpu.pipeline_mode<synchronous>, transform_indices = @transform_3, window_bounds = array<i64: 16, 256>}, {pipeline_mode = #tpu.pipeline_mode<synchronous>, transform_indices = @transform_4, window_bounds = array<i64: 16, 1>}, {pipeline_mode = #tpu.pipeline_mode<synchronous>, transform_indices = @transform_5, window_bounds = array<i64: 512, 188>}, {pipeline_mode = #tpu.pipeline_mode<synchronous>, transform_indices = @transform_6, window_bounds = array<i64: 173, 16>}, {transform_indices = @transform_7, window_bounds = array<i64: 1, 16, 16>}]} {
    %c0 = arith.constant 0 : index
    %c0_0 = arith.constant 0 : index
    %0 = vector.load %arg2[%c0, %c0_0] : memref<16x128xf32, #tpu.memory_space<vmem>>, vector<16x128xf32>
    %c0_1 = arith.constant 0 : index
    %c0_2 = arith.constant 0 : index
    %1 = vector.load %arg3[%c0_1, %c0_2] : memref<16x1xf32, #tpu.memory_space<vmem>>, vector<16x1xf32>
    %c0_3 = arith.constant 0 : index
    %c0_4 = arith.constant 0 : index
    %2 = vector.load %arg4[%c0_3, %c0_4] : memref<16x256xf32, #tpu.memory_space<vmem>>, vector<16x256xf32>
    %c0_5 = arith.constant 0 : index
    %c0_6 = arith.constant 0 : index
    %3 = vector.load %arg5[%c0_5, %c0_6] : memref<16x1xf32, #tpu.memory_space<vmem>>, vector<16x1xf32>
    %c0_7 = arith.constant 0 : index
    %c0_8 = arith.constant 0 : index
    %4 = vector.load %arg6[%c0_7, %c0_8] : memref<512x188xf32, #tpu.memory_space<vmem>>, vector<512x188xf32>
    %c0_9 = arith.constant 0 : index
    %c0_10 = arith.constant 0 : index
    %5 = vector.load %arg7[%c0_9, %c0_10] : memref<173x16xf32, #tpu.memory_space<vmem>>, vector<173x16xf32>
    %c0_11 = arith.constant 0 : index
    %c0_12 = arith.constant 0 : index
    %c0_13 = arith.constant 0 : index
    %6 = vector.load %arg1[%c0_11, %c0_12, %c0_13] : memref<4x8x143xf32, #tpu.memory_space<vmem>>, vector<1x8x143xf32>
    %7 = vector.shape_cast %6 : vector<1x8x143xf32> to vector<8x143xf32>
    %8 = vector.extract_strided_slice %7 {offsets = [0, 0], sizes = [8, 128], strides = [1, 1]} : vector<8x143xf32> to vector<8x128xf32>
    %9 = vector.extract_strided_slice %7 {offsets = [0, 1], sizes = [8, 128], strides = [1, 1]} : vector<8x143xf32> to vector<8x128xf32>
    %10 = vector.extract_strided_slice %7 {offsets = [0, 2], sizes = [8, 128], strides = [1, 1]} : vector<8x143xf32> to vector<8x128xf32>
    %11 = vector.extract_strided_slice %7 {offsets = [0, 3], sizes = [8, 128], strides = [1, 1]} : vector<8x143xf32> to vector<8x128xf32>
    %12 = vector.extract_strided_slice %7 {offsets = [0, 4], sizes = [8, 128], strides = [1, 1]} : vector<8x143xf32> to vector<8x128xf32>
    %13 = vector.extract_strided_slice %7 {offsets = [0, 5], sizes = [8, 128], strides = [1, 1]} : vector<8x143xf32> to vector<8x128xf32>
    %14 = vector.extract_strided_slice %7 {offsets = [0, 6], sizes = [8, 128], strides = [1, 1]} : vector<8x143xf32> to vector<8x128xf32>
    %15 = vector.extract_strided_slice %7 {offsets = [0, 7], sizes = [8, 128], strides = [1, 1]} : vector<8x143xf32> to vector<8x128xf32>
    %16 = vector.extract_strided_slice %7 {offsets = [0, 8], sizes = [8, 128], strides = [1, 1]} : vector<8x143xf32> to vector<8x128xf32>
    %17 = vector.extract_strided_slice %7 {offsets = [0, 9], sizes = [8, 128], strides = [1, 1]} : vector<8x143xf32> to vector<8x128xf32>
    %18 = vector.extract_strided_slice %7 {offsets = [0, 10], sizes = [8, 128], strides = [1, 1]} : vector<8x143xf32> to vector<8x128xf32>
    %19 = vector.extract_strided_slice %7 {offsets = [0, 11], sizes = [8, 128], strides = [1, 1]} : vector<8x143xf32> to vector<8x128xf32>
    %20 = vector.extract_strided_slice %7 {offsets = [0, 12], sizes = [8, 128], strides = [1, 1]} : vector<8x143xf32> to vector<8x128xf32>
    %21 = vector.extract_strided_slice %7 {offsets = [0, 13], sizes = [8, 128], strides = [1, 1]} : vector<8x143xf32> to vector<8x128xf32>
    %22 = vector.extract_strided_slice %7 {offsets = [0, 14], sizes = [8, 128], strides = [1, 1]} : vector<8x143xf32> to vector<8x128xf32>
    %23 = vector.extract_strided_slice %7 {offsets = [0, 15], sizes = [8, 128], strides = [1, 1]} : vector<8x143xf32> to vector<8x128xf32>
    %24 = tpu.concatenate %8, %9, %10, %11, %12, %13, %14, %15, %16, %17, %18, %19, %20, %21, %22, %23 in 0 : vector<8x128xf32>, vector<8x128xf32>, vector<8x128xf32>, vector<8x128xf32>, vector<8x128xf32>, vector<8x128xf32>, vector<8x128xf32>, vector<8x128xf32>, vector<8x128xf32>, vector<8x128xf32>, vector<8x128xf32>, vector<8x128xf32>, vector<8x128xf32>, vector<8x128xf32>, vector<8x128xf32>, vector<8x128xf32> -> vector<128x128xf32>
    %c1 = arith.constant 1 : index
    %c0_14 = arith.constant 0 : index
    %c0_15 = arith.constant 0 : index
    %25 = vector.load %arg1[%c1, %c0_14, %c0_15] : memref<4x8x143xf32, #tpu.memory_space<vmem>>, vector<1x8x143xf32>
    %26 = vector.shape_cast %25 : vector<1x8x143xf32> to vector<8x143xf32>
    %27 = vector.extract_strided_slice %26 {offsets = [0, 0], sizes = [8, 128], strides = [1, 1]} : vector<8x143xf32> to vector<8x128xf32>
    %28 = vector.extract_strided_slice %26 {offsets = [0, 1], sizes = [8, 128], strides = [1, 1]} : vector<8x143xf32> to vector<8x128xf32>
    %29 = vector.extract_strided_slice %26 {offsets = [0, 2], sizes = [8, 128], strides = [1, 1]} : vector<8x143xf32> to vector<8x128xf32>
    %30 = vector.extract_strided_slice %26 {offsets = [0, 3], sizes = [8, 128], strides = [1, 1]} : vector<8x143xf32> to vector<8x128xf32>
    %31 = vector.extract_strided_slice %26 {offsets = [0, 4], sizes = [8, 128], strides = [1, 1]} : vector<8x143xf32> to vector<8x128xf32>
    %32 = vector.extract_strided_slice %26 {offsets = [0, 5], sizes = [8, 128], strides = [1, 1]} : vector<8x143xf32> to vector<8x128xf32>
    %33 = vector.extract_strided_slice %26 {offsets = [0, 6], sizes = [8, 128], strides = [1, 1]} : vector<8x143xf32> to vector<8x128xf32>
    %34 = vector.extract_strided_slice %26 {offsets = [0, 7], sizes = [8, 128], strides = [1, 1]} : vector<8x143xf32> to vector<8x128xf32>
    %35 = vector.extract_strided_slice %26 {offsets = [0, 8], sizes = [8, 128], strides = [1, 1]} : vector<8x143xf32> to vector<8x128xf32>
    %36 = vector.extract_strided_slice %26 {offsets = [0, 9], sizes = [8, 128], strides = [1, 1]} : vector<8x143xf32> to vector<8x128xf32>
    %37 = vector.extract_strided_slice %26 {offsets = [0, 10], sizes = [8, 128], strides = [1, 1]} : vector<8x143xf32> to vector<8x128xf32>
    %38 = vector.extract_strided_slice %26 {offsets = [0, 11], sizes = [8, 128], strides = [1, 1]} : vector<8x143xf32> to vector<8x128xf32>
    %39 = vector.extract_strided_slice %26 {offsets = [0, 12], sizes = [8, 128], strides = [1, 1]} : vector<8x143xf32> to vector<8x128xf32>
    %40 = vector.extract_strided_slice %26 {offsets = [0, 13], sizes = [8, 128], strides = [1, 1]} : vector<8x143xf32> to vector<8x128xf32>
    %41 = vector.extract_strided_slice %26 {offsets = [0, 14], sizes = [8, 128], strides = [1, 1]} : vector<8x143xf32> to vector<8x128xf32>
    %42 = vector.extract_strided_slice %26 {offsets = [0, 15], sizes = [8, 128], strides = [1, 1]} : vector<8x143xf32> to vector<8x128xf32>
    %43 = tpu.concatenate %27, %28, %29, %30, %31, %32, %33, %34, %35, %36, %37, %38, %39, %40, %41, %42 in 0 : vector<8x128xf32>, vector<8x128xf32>, vector<8x128xf32>, vector<8x128xf32>, vector<8x128xf32>, vector<8x128xf32>, vector<8x128xf32>, vector<8x128xf32>, vector<8x128xf32>, vector<8x128xf32>, vector<8x128xf32>, vector<8x128xf32>, vector<8x128xf32>, vector<8x128xf32>, vector<8x128xf32>, vector<8x128xf32> -> vector<128x128xf32>
    %c2 = arith.constant 2 : index
    %c0_16 = arith.constant 0 : index
    %c0_17 = arith.constant 0 : index
    %44 = vector.load %arg1[%c2, %c0_16, %c0_17] : memref<4x8x143xf32, #tpu.memory_space<vmem>>, vector<1x8x143xf32>
    %45 = vector.shape_cast %44 : vector<1x8x143xf32> to vector<8x143xf32>
    %46 = vector.extract_strided_slice %45 {offsets = [0, 0], sizes = [8, 128], strides = [1, 1]} : vector<8x143xf32> to vector<8x128xf32>
    %47 = vector.extract_strided_slice %45 {offsets = [0, 1], sizes = [8, 128], strides = [1, 1]} : vector<8x143xf32> to vector<8x128xf32>
    %48 = vector.extract_strided_slice %45 {offsets = [0, 2], sizes = [8, 128], strides = [1, 1]} : vector<8x143xf32> to vector<8x128xf32>
    %49 = vector.extract_strided_slice %45 {offsets = [0, 3], sizes = [8, 128], strides = [1, 1]} : vector<8x143xf32> to vector<8x128xf32>
    %50 = vector.extract_strided_slice %45 {offsets = [0, 4], sizes = [8, 128], strides = [1, 1]} : vector<8x143xf32> to vector<8x128xf32>
    %51 = vector.extract_strided_slice %45 {offsets = [0, 5], sizes = [8, 128], strides = [1, 1]} : vector<8x143xf32> to vector<8x128xf32>
    %52 = vector.extract_strided_slice %45 {offsets = [0, 6], sizes = [8, 128], strides = [1, 1]} : vector<8x143xf32> to vector<8x128xf32>
    %53 = vector.extract_strided_slice %45 {offsets = [0, 7], sizes = [8, 128], strides = [1, 1]} : vector<8x143xf32> to vector<8x128xf32>
    %54 = vector.extract_strided_slice %45 {offsets = [0, 8], sizes = [8, 128], strides = [1, 1]} : vector<8x143xf32> to vector<8x128xf32>
    %55 = vector.extract_strided_slice %45 {offsets = [0, 9], sizes = [8, 128], strides = [1, 1]} : vector<8x143xf32> to vector<8x128xf32>
    %56 = vector.extract_strided_slice %45 {offsets = [0, 10], sizes = [8, 128], strides = [1, 1]} : vector<8x143xf32> to vector<8x128xf32>
    %57 = vector.extract_strided_slice %45 {offsets = [0, 11], sizes = [8, 128], strides = [1, 1]} : vector<8x143xf32> to vector<8x128xf32>
    %58 = vector.extract_strided_slice %45 {offsets = [0, 12], sizes = [8, 128], strides = [1, 1]} : vector<8x143xf32> to vector<8x128xf32>
    %59 = vector.extract_strided_slice %45 {offsets = [0, 13], sizes = [8, 128], strides = [1, 1]} : vector<8x143xf32> to vector<8x128xf32>
    %60 = vector.extract_strided_slice %45 {offsets = [0, 14], sizes = [8, 128], strides = [1, 1]} : vector<8x143xf32> to vector<8x128xf32>
    %61 = vector.extract_strided_slice %45 {offsets = [0, 15], sizes = [8, 128], strides = [1, 1]} : vector<8x143xf32> to vector<8x128xf32>
    %62 = tpu.concatenate %46, %47, %48, %49, %50, %51, %52, %53, %54, %55, %56, %57, %58, %59, %60, %61 in 0 : vector<8x128xf32>, vector<8x128xf32>, vector<8x128xf32>, vector<8x128xf32>, vector<8x128xf32>, vector<8x128xf32>, vector<8x128xf32>, vector<8x128xf32>, vector<8x128xf32>, vector<8x128xf32>, vector<8x128xf32>, vector<8x128xf32>, vector<8x128xf32>, vector<8x128xf32>, vector<8x128xf32>, vector<8x128xf32> -> vector<128x128xf32>
    %c3 = arith.constant 3 : index
    %c0_18 = arith.constant 0 : index
    %c0_19 = arith.constant 0 : index
    %63 = vector.load %arg1[%c3, %c0_18, %c0_19] : memref<4x8x143xf32, #tpu.memory_space<vmem>>, vector<1x8x143xf32>
    %64 = vector.shape_cast %63 : vector<1x8x143xf32> to vector<8x143xf32>
    %65 = vector.extract_strided_slice %64 {offsets = [0, 0], sizes = [8, 128], strides = [1, 1]} : vector<8x143xf32> to vector<8x128xf32>
    %66 = vector.extract_strided_slice %64 {offsets = [0, 1], sizes = [8, 128], strides = [1, 1]} : vector<8x143xf32> to vector<8x128xf32>
    %67 = vector.extract_strided_slice %64 {offsets = [0, 2], sizes = [8, 128], strides = [1, 1]} : vector<8x143xf32> to vector<8x128xf32>
    %68 = vector.extract_strided_slice %64 {offsets = [0, 3], sizes = [8, 128], strides = [1, 1]} : vector<8x143xf32> to vector<8x128xf32>
    %69 = vector.extract_strided_slice %64 {offsets = [0, 4], sizes = [8, 128], strides = [1, 1]} : vector<8x143xf32> to vector<8x128xf32>
    %70 = vector.extract_strided_slice %64 {offsets = [0, 5], sizes = [8, 128], strides = [1, 1]} : vector<8x143xf32> to vector<8x128xf32>
    %71 = vector.extract_strided_slice %64 {offsets = [0, 6], sizes = [8, 128], strides = [1, 1]} : vector<8x143xf32> to vector<8x128xf32>
    %72 = vector.extract_strided_slice %64 {offsets = [0, 7], sizes = [8, 128], strides = [1, 1]} : vector<8x143xf32> to vector<8x128xf32>
    %73 = vector.extract_strided_slice %64 {offsets = [0, 8], sizes = [8, 128], strides = [1, 1]} : vector<8x143xf32> to vector<8x128xf32>
    %74 = vector.extract_strided_slice %64 {offsets = [0, 9], sizes = [8, 128], strides = [1, 1]} : vector<8x143xf32> to vector<8x128xf32>
    %75 = vector.extract_strided_slice %64 {offsets = [0, 10], sizes = [8, 128], strides = [1, 1]} : vector<8x143xf32> to vector<8x128xf32>
    %76 = vector.extract_strided_slice %64 {offsets = [0, 11], sizes = [8, 128], strides = [1, 1]} : vector<8x143xf32> to vector<8x128xf32>
    %77 = vector.extract_strided_slice %64 {offsets = [0, 12], sizes = [8, 128], strides = [1, 1]} : vector<8x143xf32> to vector<8x128xf32>
    %78 = vector.extract_strided_slice %64 {offsets = [0, 13], sizes = [8, 128], strides = [1, 1]} : vector<8x143xf32> to vector<8x128xf32>
    %79 = vector.extract_strided_slice %64 {offsets = [0, 14], sizes = [8, 128], strides = [1, 1]} : vector<8x143xf32> to vector<8x128xf32>
    %80 = vector.extract_strided_slice %64 {offsets = [0, 15], sizes = [8, 128], strides = [1, 1]} : vector<8x143xf32> to vector<8x128xf32>
    %81 = tpu.concatenate %65, %66, %67, %68, %69, %70, %71, %72, %73, %74, %75, %76, %77, %78, %79, %80 in 0 : vector<8x128xf32>, vector<8x128xf32>, vector<8x128xf32>, vector<8x128xf32>, vector<8x128xf32>, vector<8x128xf32>, vector<8x128xf32>, vector<8x128xf32>, vector<8x128xf32>, vector<8x128xf32>, vector<8x128xf32>, vector<8x128xf32>, vector<8x128xf32>, vector<8x128xf32>, vector<8x128xf32>, vector<8x128xf32> -> vector<128x128xf32>
    %82 = tpu.concatenate %24, %43, %62, %81 in 1 : vector<128x128xf32>, vector<128x128xf32>, vector<128x128xf32>, vector<128x128xf32> -> vector<128x512xf32>
    %cst = arith.constant dense<0.000000e+00> : vector<16x512xf32>
    %83 = tpu.matmul %0, %82, %cst {dimension_numbers = #tpu.dot_dimension_numbers<[1], [0], [0], [1], [0, 0, 1, 1], [], []>} : vector<16x128xf32>, vector<128x512xf32>, vector<16x512xf32> -> vector<16x512xf32>
    %84 = vector.broadcast %1 : vector<16x1xf32> to vector<16x512xf32>
    %85 = arith.addf %83, %84 : vector<16x512xf32>
    %cst_20 = arith.constant 0.000000e+00 : f32
    %86 = vector.broadcast %cst_20 : f32 to vector<16x512xf32>
    %87 = arith.cmpf ogt, %85, %86 : vector<16x512xf32>
    %cst_21 = arith.constant 0.000000e+00 : f32
    %88 = vector.broadcast %cst_21 : f32 to vector<16x512xf32>
    %89 = arith.minimumf %85, %88 : vector<16x512xf32>
    %90 = math.exp %89 : vector<16x512xf32>
    %cst_22 = arith.constant 1.000000e+00 : f32
    %91 = vector.broadcast %cst_22 : f32 to vector<16x512xf32>
    %92 = arith.subf %90, %91 : vector<16x512xf32>
    %cst_23 = arith.constant 1.000000e+00 : f32
    %93 = vector.broadcast %cst_23 : f32 to vector<16x512xf32>
    %94 = arith.mulf %93, %92 : vector<16x512xf32>
    %95 = arith.select %87, %85, %94 : vector<16x512xi1>, vector<16x512xf32>
    %cst_24 = arith.constant dense<0.000000e+00> : vector<16x188xf32>
    %96 = tpu.matmul %95, %4, %cst_24 {dimension_numbers = #tpu.dot_dimension_numbers<[1], [0], [0], [1], [0, 0, 1, 1], [], []>} : vector<16x512xf32>, vector<512x188xf32>, vector<16x188xf32> -> vector<16x188xf32>
    %97 = vector.extract_strided_slice %96 {offsets = [0, 0], sizes = [16, 173], strides = [1, 1]} : vector<16x188xf32> to vector<16x173xf32>
    %98 = vector.extract_strided_slice %96 {offsets = [0, 1], sizes = [16, 173], strides = [1, 1]} : vector<16x188xf32> to vector<16x173xf32>
    %99 = vector.extract_strided_slice %96 {offsets = [0, 2], sizes = [16, 173], strides = [1, 1]} : vector<16x188xf32> to vector<16x173xf32>
    %100 = vector.extract_strided_slice %96 {offsets = [0, 3], sizes = [16, 173], strides = [1, 1]} : vector<16x188xf32> to vector<16x173xf32>
    %101 = vector.extract_strided_slice %96 {offsets = [0, 4], sizes = [16, 173], strides = [1, 1]} : vector<16x188xf32> to vector<16x173xf32>
    %102 = vector.extract_strided_slice %96 {offsets = [0, 5], sizes = [16, 173], strides = [1, 1]} : vector<16x188xf32> to vector<16x173xf32>
    %103 = vector.extract_strided_slice %96 {offsets = [0, 6], sizes = [16, 173], strides = [1, 1]} : vector<16x188xf32> to vector<16x173xf32>
    %104 = vector.extract_strided_slice %96 {offsets = [0, 7], sizes = [16, 173], strides = [1, 1]} : vector<16x188xf32> to vector<16x173xf32>
    %105 = vector.extract_strided_slice %96 {offsets = [0, 8], sizes = [16, 173], strides = [1, 1]} : vector<16x188xf32> to vector<16x173xf32>
    %106 = vector.extract_strided_slice %96 {offsets = [0, 9], sizes = [16, 173], strides = [1, 1]} : vector<16x188xf32> to vector<16x173xf32>
    %107 = vector.extract_strided_slice %96 {offsets = [0, 10], sizes = [16, 173], strides = [1, 1]} : vector<16x188xf32> to vector<16x173xf32>
    %108 = vector.extract_strided_slice %96 {offsets = [0, 11], sizes = [16, 173], strides = [1, 1]} : vector<16x188xf32> to vector<16x173xf32>
    %109 = vector.extract_strided_slice %96 {offsets = [0, 12], sizes = [16, 173], strides = [1, 1]} : vector<16x188xf32> to vector<16x173xf32>
    %110 = vector.extract_strided_slice %96 {offsets = [0, 13], sizes = [16, 173], strides = [1, 1]} : vector<16x188xf32> to vector<16x173xf32>
    %111 = vector.extract_strided_slice %96 {offsets = [0, 14], sizes = [16, 173], strides = [1, 1]} : vector<16x188xf32> to vector<16x173xf32>
    %112 = vector.extract_strided_slice %96 {offsets = [0, 15], sizes = [16, 173], strides = [1, 1]} : vector<16x188xf32> to vector<16x173xf32>
    %113 = tpu.concatenate %97, %98, %99, %100, %101, %102, %103, %104, %105, %106, %107, %108, %109, %110, %111, %112 in 0 : vector<16x173xf32>, vector<16x173xf32>, vector<16x173xf32>, vector<16x173xf32>, vector<16x173xf32>, vector<16x173xf32>, vector<16x173xf32>, vector<16x173xf32>, vector<16x173xf32>, vector<16x173xf32>, vector<16x173xf32>, vector<16x173xf32>, vector<16x173xf32>, vector<16x173xf32>, vector<16x173xf32>, vector<16x173xf32> -> vector<256x173xf32>
    %cst_25 = arith.constant dense<0.000000e+00> : vector<16x173xf32>
    %114 = tpu.matmul %2, %113, %cst_25 {dimension_numbers = #tpu.dot_dimension_numbers<[1], [0], [0], [1], [0, 0, 1, 1], [], []>} : vector<16x256xf32>, vector<256x173xf32>, vector<16x173xf32> -> vector<16x173xf32>
    %115 = vector.broadcast %3 : vector<16x1xf32> to vector<16x173xf32>
    %116 = arith.addf %114, %115 : vector<16x173xf32>
    %cst_26 = arith.constant 0.000000e+00 : f32
    %117 = vector.broadcast %cst_26 : f32 to vector<16x173xf32>
    %118 = arith.cmpf ogt, %116, %117 : vector<16x173xf32>
    %cst_27 = arith.constant 0.000000e+00 : f32
    %119 = vector.broadcast %cst_27 : f32 to vector<16x173xf32>
    %120 = arith.minimumf %116, %119 : vector<16x173xf32>
    %121 = math.exp %120 : vector<16x173xf32>
    %cst_28 = arith.constant 1.000000e+00 : f32
    %122 = vector.broadcast %cst_28 : f32 to vector<16x173xf32>
    %123 = arith.subf %121, %122 : vector<16x173xf32>
    %cst_29 = arith.constant 1.000000e+00 : f32
    %124 = vector.broadcast %cst_29 : f32 to vector<16x173xf32>
    %125 = arith.mulf %124, %123 : vector<16x173xf32>
    %126 = arith.select %118, %116, %125 : vector<16x173xi1>, vector<16x173xf32>
    %cst_30 = arith.constant dense<0.000000e+00> : vector<16x16xf32>
    %127 = tpu.matmul %126, %5, %cst_30 {dimension_numbers = #tpu.dot_dimension_numbers<[1], [0], [0], [1], [0, 0, 1, 1], [], []>} : vector<16x173xf32>, vector<173x16xf32>, vector<16x16xf32> -> vector<16x16xf32>
    %c0_31 = arith.constant 0 : index
    %c0_32 = arith.constant 0 : index
    %c0_33 = arith.constant 0 : index
    %128 = vector.load %arg8[%c0_31, %c0_32, %c0_33] : memref<1x16x16xf32, #tpu.memory_space<vmem>>, vector<1x16x16xf32>
    %129 = vector.shape_cast %128 : vector<1x16x16xf32> to vector<16x16xf32>
    %130 = vector.shape_cast %127 : vector<16x16xf32> to vector<1x16x16xf32>
    tpu.vector_store %arg8[%c0_31, %c0_32, %c0_33], %130 {strides = array<i32>} : memref<1x16x16xf32, #tpu.memory_space<vmem>>, vector<1x16x16xf32>,
    return
  }
  func.func @transform_0(%arg0: i32) -> (i32, i32, i32) {
    %c0_i32 = arith.constant 0 : i32
    %c0_i32_0 = arith.constant 0 : i32
    %c0_i32_1 = arith.constant 0 : i32
    return %arg0, %c0_i32, %c0_i32_0 : i32, i32, i32
  }
  func.func @transform_1(%arg0: i32) -> (i32, i32) {
    %c0_i32 = arith.constant 0 : i32
    %c0_i32_0 = arith.constant 0 : i32
    %c0_i32_1 = arith.constant 0 : i32
    return %c0_i32, %c0_i32_0 : i32, i32
  }
  func.func @transform_2(%arg0: i32) -> (i32, i32) {
    %c0_i32 = arith.constant 0 : i32
    %c0_i32_0 = arith.constant 0 : i32
    %c0_i32_1 = arith.constant 0 : i32
    return %c0_i32, %c0_i32_0 : i32, i32
  }
  func.func @transform_3(%arg0: i32) -> (i32, i32) {
    %c0_i32 = arith.constant 0 : i32
    %c0_i32_0 = arith.constant 0 : i32
    %c0_i32_1 = arith.constant 0 : i32
    return %c0_i32, %c0_i32_0 : i32, i32
  }
  func.func @transform_4(%arg0: i32) -> (i32, i32) {
    %c0_i32 = arith.constant 0 : i32
    %c0_i32_0 = arith.constant 0 : i32
    %c0_i32_1 = arith.constant 0 : i32
    return %c0_i32, %c0_i32_0 : i32, i32
  }
  func.func @transform_5(%arg0: i32) -> (i32, i32) {
    %c0_i32 = arith.constant 0 : i32
    %c0_i32_0 = arith.constant 0 : i32
    %c0_i32_1 = arith.constant 0 : i32
    return %c0_i32, %c0_i32_0 : i32, i32
  }
  func.func @transform_6(%arg0: i32) -> (i32, i32) {
    %c0_i32 = arith.constant 0 : i32
    %c0_i32_0 = arith.constant 0 : i32
    %c0_i32_1 = arith.constant 0 : i32
    return %c0_i32, %c0_i32_0 : i32, i32
  }
  func.func @transform_7(%arg0: i32) -> (i32, i32, i32) {
    %c0_i32 = arith.constant 0 : i32
    %c0_i32_0 = arith.constant 0 : i32
    %c0_i32_1 = arith.constant 0 : i32
    return %arg0, %c0_i32, %c0_i32_0 : i32, i32, i32
  }
}

</mosaic_0001>

<bundles_post_ra>
// kernel: tpu_custom_call.1
= control target key start
LH: loop header
LB: loop body
LE: loop exit
PB: predicated region body
PF: predicated region fallthrough
CT: control target
= control target key end

     0   :  { %12 = vsyncpa [#allocation3], 0  ;;  %s3506_s0 = inlined_call_operand.vmem [shape: f32[8,8,143], index: 0, kind: input, shape index: {}]   ;;  %s3507_s1 = inlined_call_operand.vmem [shape: f32[16,128], index: 1, kind: input, shape index: {}]   ;;  %s3508_s2 = inlined_call_operand.vmem [shape: f32[16,1], index: 2, kind: input, shape index: {}]   ;;  %s3509_s3 = inlined_call_operand.vmem [shape: f32[16,256], index: 3, kind: input, shape index: {}]   ;;  %s3510_s4 = inlined_call_operand.vmem [shape: f32[16,1], index: 4, kind: input, shape index: {}]   ;;  %s3511_s5 = inlined_call_operand.vmem [shape: f32[512,188], index: 5, kind: input, shape index: {}]   ;;  %s3512_s6 = inlined_call_operand.vmem [shape: f32[173,16], index: 6, kind: input, shape index: {}]   ;;  %s3513_s7 = inlined_call_operand.hbm [shape: f32[2,16,16], index: 7, kind: output, shape index: {}]  }
   0x1   :  { %14 = vsyncpa [#allocation3 + $0x1], 0  ;;  %s2684_s24 = smov 0   ;;  %s2686_s25 = smov 0  }
   0x2   :  { %s2688_s26 = smov 0   ;;  %s2690_s27 = smov 0  }
   0x3 LB: > { %s2705_s28 = sadd.s32 4294967295, %s2620_s27   ;;  %s1692_s29 = sadd.s32 4294967294, %s2620_s27   ;;  %s2620_s27 = sphi %s2690_s27, %s3567_s27   ;;  %s2616_s26 = sphi %s2688_s26, %s3566_s26   ;;  %s2612_s25 = sphi %s2686_s25, %s3565_s25   ;;  %s2608_s24 = sphi %s2684_s24, %s3564_s24  }
   0x4   : > { %s2709_s30 = sadd.s32 1, %s2620_s27   ;;  %s179_s8 = sadd.s32 1, %s2616_s26 }
   0x5   : > { %s176_s9 = ssub.s32 %s2620_s27, %s2709_s30  ;;  %p189_p0 = scmp.ne.s32.totalorder %s2616_s26, %s2612_s25 }
   0x6   : > { %p177_p1 = scmp.eq.s32.totalorder %s176_s9, 0  ;;  %p190_p2 = scmp.eq.s32.totalorder %s2705_s28, 1 }
   0x7   : > { %p195_p3 = scmp.ne.s32.totalorder %s2612_s25, %s2608_s24  ;;  %p196_p4 = scmp.eq.s32.totalorder %s1692_s29, 1 }
   0x8   : > { %s2720_s10 = scalar_select %p177_p1, %s2616_s26, %s179_s8  }
   0x9   : > { %p2722_p5 = por %p190_p2, %p189_p0  ;;  %p2726_p6 = por %p196_p4, %p195_p3 }
   0xa   : > { %p1695_p7 = scmp.ge.s32.totalorder %s2620_s27, 1  ;;  %p242_p8 = scmp.lt.s32.totalorder %s2620_s27, 3 }
   0xc   : > { %p243_p9 = pnand %p1695_p7, %p242_p8 }
   0xd   : > { %s1697_s13 = sshll.u32 (!%p243_p9), %s2705_s28, 2  ;;  %s2622_s18 = smov (!%p243_p9), 126   ;;  %v2635_v6 = vmov (!%p243_p9), 0.0   ;;  %vm450_vm0 = vcmask (!%p243_p9), 1039360   ;;  %v2638_v20 = vmov (!%p243_p9), 0   ;;  %v284_v21 = vld [vmem:[%s3508_s2] sm:$0xff] (!%p243_p9) }
   0xe   : > { %246 = sbr.rel (%p243_p9) target bundleno = 1367 (0x557), region = 48  ;;  %p276_p10 = scmp.lt.s32.totalorder (!%p243_p9), %s1697_s13, 7  ;;  %910 = vmatprep.mubr.f32.mxu0 (!%p243_p9), %v2635_v6  ;;  %987 = vmatprep.mubr.f32.mxu1 (!%p243_p9), %v2635_v6  ;;  %vm457_vm1 = vcmask (!%p243_p9), 1031168   ;;  %vm464_vm2 = vcmask (!%p243_p9), 1022976   ;;  %v285_v25 = vld [vmem:[%s3508_s2 + $0x8] sm:$0xff] (!%p243_p9)  ;;  %vm471_vm3 = vcmask (!%p243_p9), 1014784  }
   0xf   : > { %s2623_s19 = smov (!%p243_p9), 127   ;;  %s3538_s20 = smov (!%p243_p9), 125   ;;  %2382 = vset.pattern.permute.xlu0 (!%p243_p9), %v2638_v20  ;;  %2383 = vset.pattern.permute.xlu1 (!%p243_p9), %v2638_v20  ;;  %vm478_vm4 = vcmask (!%p243_p9), 1006592   ;;  %vm485_vm5 = vcmask (!%p243_p9), 998400   ;;  %vm492_vm6 = vcmask (!%p243_p9), 990208   ;;  %vm499_vm7 = vcmask (!%p243_p9), 982016  }
  0x10   : > { %s3518_s21 = smov (!%p243_p9), 123   ;;  %s3536_s22 = smov (!%p243_p9), 124   ;;  %vm506_vm8 = vcmask (!%p243_p9), 973824   ;;  %vm513_vm9 = vcmask (!%p243_p9), 965632   ;;  %vm520_vm10 = vcmask (!%p243_p9), 957440   ;;  %vm527_vm11 = vcmask (!%p243_p9), 949248  }
  0x11   : > { %s3532_s23 = smov (!%p243_p9), 121   ;;  %s3534_s29 = smov (!%p243_p9), 122   ;;  %vm3542_vm12 = vcmask (!%p243_p9), 941056   ;;  %vm3541_vm13 = vcmask (!%p243_p9), 932864   ;;  %vm3540_vm14 = vcmask (!%p243_p9), 924672  }
  0x12   : > { %s3526_s8 = smov (!%p243_p9), 119   ;;  %s3530_s9 = smov (!%p243_p9), 120  }
  0x13   : > { %s3520_s15 = smov (!%p243_p9), 115   ;;  %s3522_s16 = smov (!%p243_p9), 116  }
  0x15   : > { %s3569_s13 = smov (!%p276_p10, %s1697_s13), 7 }
  0x16   : > { %s1726_s14 = sshll.u32 %s3569_s13, 4  ;;  %s3514_s13 = smov 117  }
  0x17   : > { %s2736_s17 = scalar_lea.vmem %s3506_s0, %s1726_s14  ;;  %s3516_s14 = smov 118  }
  0x18   : > { %v2739_v0 = vld [vmem:[%s2736_s17 + $0x10] sm:$0xff]  ;;  %v1701_v1 = vld [vmem:[%s2736_s17 + $0x18] sm:$0xff]  ;;  %v2743_v2 = vld [vmem:[%s2736_s17] sm:$0xff] }
  0x19   : > { %v2092_v3 = vpack.i.bf16 %v1701_v1, %v2739_v0  ;;  %v443_v4 = vld [vmem:[%s2736_s17 + $0x8] sm:$0xff]  ;;  %v2779_v7 = vld [vmem:[%s2736_s17 + $0x20] sm:$0xff]  ;;  %v2783_v9 = vld [vmem:[%s2736_s17 + $0x30] sm:$0xff] }
  0x1a   : > { %v2087_v5 = vpack.i.bf16 %v443_v4, %v2743_v2  ;;  %v1703_v8 = vld [vmem:[%s2736_s17 + $0x28] sm:$0xff]  ;;  %v1705_v10 = vld [vmem:[%s2736_s17 + $0x38] sm:$0xff]  ;;  %s3545_s17 = smov 117  }
  0x1b   : > { %2093 = vrot.lane.b32.xlu1 %v2092_v3, %s2622_s18  ;;  %2083 = vrot.lane.b32.xlu0 %v2092_v3, %s2623_s19  ;;  %v2237_v11 = vpack.i.bf16 %v1703_v8, %v2779_v7  ;;  %v2232_v12 = vpack.i.bf16 %v1705_v10, %v2783_v9 }
  0x1f   : > { %2098 = vrot.lane.b32.xlu1 %v2092_v3, %s3538_s20  ;;  %2088 = vrot.lane.b32.xlu0 %v2087_v5, %s2623_s19 }
  0x23   : > { %2108 = vrot.lane.b32.xlu1 %v2087_v5, %s3538_s20  ;;  %2103 = vrot.lane.b32.xlu0 %v2087_v5, %s2622_s18 }
  0x27   : > { %2118 = vrot.lane.b32.xlu1 %v2092_v3, %s3518_s21  ;;  %2113 = vrot.lane.b32.xlu0 %v2092_v3, %s3536_s22 }
  0x2b   : > { %2128 = vrot.lane.b32.xlu1 %v2087_v5, %s3518_s21  ;;  %2123 = vrot.lane.b32.xlu0 %v2087_v5, %s3536_s22 }
  0x2f   : > { %2138 = vrot.lane.b32.xlu1 %v2092_v3, %s3532_s23  ;;  %2133 = vrot.lane.b32.xlu0 %v2092_v3, %s3534_s29 }
  0x33   : > { %2148 = vrot.lane.b32.xlu1 %v2087_v5, %s3532_s23  ;;  %2143 = vrot.lane.b32.xlu0 %v2087_v5, %s3534_s29 }
  0x37   : > { %2158 = vrot.lane.b32.xlu1 %v2092_v3, %s3526_s8  ;;  %2153 = vrot.lane.b32.xlu0 %v2092_v3, %s3530_s9 }
  0x3b   : > { %2168 = vrot.lane.b32.xlu1 %v2087_v5, %s3526_s8  ;;  %2163 = vrot.lane.b32.xlu0 %v2087_v5, %s3530_s9 }
  0x3f   : > { %2178 = vrot.lane.b32.xlu1 %v2092_v3, %s3514_s13  ;;  %2173 = vrot.lane.b32.xlu0 %v2092_v3, %s3516_s14 }
  0x43   : > { %2188 = vrot.lane.b32.xlu1 %v2087_v5, %s3514_s13  ;;  %2183 = vrot.lane.b32.xlu0 %v2087_v5, %s3516_s14  ;;  %s3524_s13 = smov 113   ;;  %s3528_s14 = smov 114  }
  0x47   : > { %2198 = vrot.lane.b32.xlu1 %v2092_v3, %s3520_s15  ;;  %2193 = vrot.lane.b32.xlu0 %v2092_v3, %s3522_s16 }
  0x4b   : > { %2208 = vrot.lane.b32.xlu1 %v2087_v5, %s3520_s15  ;;  %2203 = vrot.lane.b32.xlu0 %v2087_v5, %s3522_s16 }
  0x4f   : > { %2218 = vrot.lane.b32.xlu1 %v2092_v3, %s3524_s13  ;;  %2213 = vrot.lane.b32.xlu0 %v2092_v3, %s3528_s14 }
  0x53   : > { %2228 = vrot.lane.b32.xlu1 %v2087_v5, %s3524_s13  ;;  %2223 = vrot.lane.b32.xlu0 %v2087_v5, %s3528_s14 }
  0x57   : > { %2238 = vrot.lane.b32.xlu1 %v2237_v11, %s2623_s19  ;;  %2233 = vrot.lane.b32.xlu0 %v2232_v12, %s2623_s19 }
  0x5b   : > { %2248 = vrot.lane.b32.xlu1 %v2232_v12, %s3538_s20  ;;  %2243 = vrot.lane.b32.xlu0 %v2232_v12, %s2622_s18 }
  0x5f   : > { %2258 = vrot.lane.b32.xlu1 %v2237_v11, %s3538_s20  ;;  %2253 = vrot.lane.b32.xlu0 %v2237_v11, %s2622_s18  ;;  %s3547_s20 = smov 125  }
  0x63   : > { %2268 = vrot.lane.b32.xlu1 %v2232_v12, %s3518_s21  ;;  %2263 = vrot.lane.b32.xlu0 %v2232_v12, %s3536_s22 }
  0x67   : > { %2278 = vrot.lane.b32.xlu1 %v2237_v11, %s3518_s21  ;;  %2273 = vrot.lane.b32.xlu0 %v2237_v11, %s3536_s22  ;;  %s3546_s21 = smov 118   ;;  %s3556_s22 = smov 114  }
  0x6b   : > { %2288 = vrot.lane.b32.xlu1 %v2232_v12, %s3532_s23  ;;  %2283 = vrot.lane.b32.xlu0 %v2232_v12, %s3534_s29 }
  0x6f   : > { %2298 = vrot.lane.b32.xlu1 %v2237_v11, %s3532_s23  ;;  %2293 = vrot.lane.b32.xlu0 %v2237_v11, %s3534_s29  ;;  %s3554_s23 = smov 116   ;;  %s3555_s29 = smov 115  }
  0x73   : > { %2308 = vrot.lane.b32.xlu1 %v2232_v12, %s3526_s8  ;;  %2303 = vrot.lane.b32.xlu0 %v2232_v12, %s3530_s9 }
  0x77   : > { %2318 = vrot.lane.b32.xlu1 %v2237_v11, %s3526_s8  ;;  %2313 = vrot.lane.b32.xlu0 %v2237_v11, %s3530_s9  ;;  %s272_s8 = sand.u32 1, %s2612_s25  }
  0x7b   : > { %2328 = vrot.lane.b32.xlu1 %v2232_v12, %s3545_s17  ;;  %2323 = vrot.lane.b32.xlu0 %v2232_v12, %s3546_s21 }
  0x7f   : > { %2338 = vrot.lane.b32.xlu1 %v2237_v11, %s3545_s17  ;;  %2333 = vrot.lane.b32.xlu0 %v2237_v11, %s3546_s21 }
  0x83   : > { %2348 = vrot.lane.b32.xlu1 %v2232_v12, %s3520_s15  ;;  %2343 = vrot.lane.b32.xlu0 %v2232_v12, %s3522_s16 }
  0x87   : > { %2358 = vrot.lane.b32.xlu1 %v2237_v11, %s3520_s15  ;;  %2353 = vrot.lane.b32.xlu0 %v2237_v11, %s3522_s16  ;;  %s3549_s15 = smov 123   ;;  %s3550_s16 = smov 122  }
  0x8b   : > { %2368 = vrot.lane.b32.xlu1 %v2232_v12, %s3524_s13  ;;  %2363 = vrot.lane.b32.xlu0 %v2232_v12, %s3528_s14 }
  0x8d   : > { %v2094_v13 = vpop.permute.xlu1 %2093  ;;  %v2084_v14 = vpop.permute.xlu0 %2083 }
  0x8e   : > { %v2086_v15 = vunpack.i.h.bf16 %v2084_v14  ;;  %v2085_v16 = vunpack.i.l.bf16 %v2084_v14  ;;  %v2096_v17 = vunpack.i.h.bf16 %v2094_v13  ;;  %v2095_v18 = vunpack.i.l.bf16 %v2094_v13 }
  0x8f   : > { %2378 = vrot.lane.b32.xlu1 %v2237_v11, %s3524_s13  ;;  %2373 = vrot.lane.b32.xlu0 %v2237_v11, %s3528_s14  ;;  %s3548_s13 = smov 124   ;;  %s3551_s14 = smov 121  }
  0x90   : > { %v560_v19 = vsel %vm450_vm0, %v2085_v16, %v2086_v15  ;;  %v566_v31 = vsel %vm457_vm1, %v2095_v18, %v2096_v17 }
  0x91   : > { %v2099_v22 = vpop.permute.xlu1 %2098  ;;  %v2089_v23 = vpop.permute.xlu0 %2088  ;;  %v1728_v24 = vpack.c.bf16 %v560_v19, %v2739_v0 }
  0x92   : > { %v2101_v26 = vunpack.i.h.bf16 %v2099_v22  ;;  %v2100_v27 = vunpack.i.l.bf16 %v2099_v22  ;;  %v2091_v28 = vunpack.i.h.bf16 %v2089_v23  ;;  %v2090_v29 = vunpack.i.l.bf16 %v2089_v23 }
  0x93   : > { %1729 = vmatprep.subr.bf16.mxu0 %v1728_v24  ;;  %838 = vperm.xlu0 %2382, %v284_v21  }
  0x94   : > { %v451_v30 = vsel %vm450_vm0, %v2090_v29, %v2091_v28  ;;  %v572_v32 = vsel %vm464_vm2, %v2100_v27, %v2101_v26  ;;  %843 = vperm.xlu1 %2383, %v285_v25  }
  0x95   : > { %v2109_v33 = vpop.permute.xlu1 %2108  ;;  %v2104_v34 = vpop.permute.xlu0 %2103  ;;  %v1730_v35 = vpack.c.bf16 %v451_v30, %v2743_v2  ;;  %v1732_v36 = vpack.c.bf16 %v572_v32, %v566_v31 }
  0x96   : > { %v2111_v37 = vunpack.i.h.bf16 %v2109_v33  ;;  %v2110_v38 = vunpack.i.l.bf16 %v2109_v33  ;;  %v2106_v39 = vunpack.i.h.bf16 %v2104_v34  ;;  %v2105_v40 = vunpack.i.l.bf16 %v2104_v34 }
  0x97   : > { %1731 = vmatpush1.bf16.msra.mxu0 %v1730_v35 }
  0x98   : > { %1733 = vmatprep.subr.bf16.mxu0 %v1732_v36  ;;  %v458_v41 = vsel %vm457_vm1, %v2105_v40, %v2106_v39  ;;  %v465_v42 = vsel %vm464_vm2, %v2110_v38, %v2111_v37 }
  0x99   : > { %v2119_v43 = vpop.permute.xlu1 %2118  ;;  %v2114_v44 = vpop.permute.xlu0 %2113  ;;  %v1734_v45 = vpack.c.bf16 %v465_v42, %v458_v41 }
  0x9a   : > { %v2121_v46 = vunpack.i.h.bf16 %v2119_v43  ;;  %v2120_v47 = vunpack.i.l.bf16 %v2119_v43  ;;  %v2116_v48 = vunpack.i.h.bf16 %v2114_v44  ;;  %v2115_v49 = vunpack.i.l.bf16 %v2114_v44 }
  0x9b   : > { %1735 = vmatpush1.bf16.msra.mxu0 %v1734_v45 }
  0x9c   : > { %v578_v50 = vsel %vm471_vm3, %v2115_v49, %v2116_v48  ;;  %v584_v51 = vsel %vm478_vm4, %v2120_v47, %v2121_v46 }
  0x9d   : > { %v2129_v52 = vpop.permute.xlu1 %2128  ;;  %v2124_v53 = vpop.permute.xlu0 %2123  ;;  %v1736_v54 = vpack.c.bf16 %v584_v51, %v578_v50 }
  0x9e   : > { %v2131_v55 = vunpack.i.h.bf16 %v2129_v52  ;;  %v2130_v56 = vunpack.i.l.bf16 %v2129_v52  ;;  %v2126_v57 = vunpack.i.h.bf16 %v2124_v53  ;;  %v2125_v58 = vunpack.i.l.bf16 %v2124_v53 }
  0x9f   : > { %1737 = vmatprep.subr.bf16.mxu0 %v1736_v54 }
  0xa0   : > { %v472_v59 = vsel %vm471_vm3, %v2125_v58, %v2126_v57  ;;  %v479_v60 = vsel %vm478_vm4, %v2130_v56, %v2131_v55 }
  0xa1   : > { %v2139_v61 = vpop.permute.xlu1 %2138  ;;  %v2134_v62 = vpop.permute.xlu0 %2133  ;;  %v1738_v63 = vpack.c.bf16 %v479_v60, %v472_v59 }
  0xa2   : > { %v2141_v0 = vunpack.i.h.bf16 %v2139_v61  ;;  %v2140_v1 = vunpack.i.l.bf16 %v2139_v61  ;;  %v2136_v2 = vunpack.i.h.bf16 %v2134_v62  ;;  %v2135_v3 = vunpack.i.l.bf16 %v2134_v62 }
  0xa3   : > { %1739 = vmatpush1.bf16.msra.mxu0 %v1738_v63 }
  0xa4   : > { %v590_v4 = vsel %vm485_vm5, %v2135_v3, %v2136_v2  ;;  %v596_v5 = vsel %vm492_vm6, %v2140_v1, %v2141_v0 }
  0xa5   : > { %v2149_v8 = vpop.permute.xlu1 %2148  ;;  %v2144_v10 = vpop.permute.xlu0 %2143  ;;  %v1740_v11 = vpack.c.bf16 %v596_v5, %v590_v4 }
  0xa6   : > { %v2151_v12 = vunpack.i.h.bf16 %v2149_v8  ;;  %v2150_v13 = vunpack.i.l.bf16 %v2149_v8  ;;  %v2146_v14 = vunpack.i.h.bf16 %v2144_v10  ;;  %v2145_v15 = vunpack.i.l.bf16 %v2144_v10 }
  0xa7   : > { %1741 = vmatprep.subr.bf16.mxu0 %v1740_v11 }
  0xa8   : > { %v486_v16 = vsel %vm485_vm5, %v2145_v15, %v2146_v14  ;;  %v493_v17 = vsel %vm492_vm6, %v2150_v13, %v2151_v12 }
  0xa9   : > { %v2159_v18 = vpop.permute.xlu1 %2158  ;;  %v2154_v19 = vpop.permute.xlu0 %2153  ;;  %v1742_v20 = vpack.c.bf16 %v493_v17, %v486_v16 }
  0xaa   : > { %v2161_v21 = vunpack.i.h.bf16 %v2159_v18  ;;  %v2160_v22 = vunpack.i.l.bf16 %v2159_v18  ;;  %v2156_v23 = vunpack.i.h.bf16 %v2154_v19  ;;  %v2155_v24 = vunpack.i.l.bf16 %v2154_v19 }
  0xab   : > { %1743 = vmatpush1.bf16.msra.mxu0 %v1742_v20 }
  0xac   : > { %v602_v25 = vsel %vm499_vm7, %v2155_v24, %v2156_v23  ;;  %v608_v26 = vsel %vm506_vm8, %v2160_v22, %v2161_v21  ;;  %v293_v23 = vld [vmem:[%s3511_s5 + $0x8] sm:$0xff]  ;;  %v295_v24 = vld [vmem:[%s3511_s5 + $0x18] sm:$0xff] }
  0xad   : > { %v2169_v27 = vpop.permute.xlu1 %2168  ;;  %v2164_v28 = vpop.permute.xlu0 %2163  ;;  %v1744_v29 = vpack.c.bf16 %v608_v26, %v602_v25 }
  0xae   : > { %v2171_v30 = vunpack.i.h.bf16 %v2169_v27  ;;  %v2170_v31 = vunpack.i.l.bf16 %v2169_v27  ;;  %v2166_v32 = vunpack.i.h.bf16 %v2164_v28  ;;  %v2165_v33 = vunpack.i.l.bf16 %v2164_v28 }
  0xaf   : > { %1745 = vmatprep.subr.bf16.mxu0 %v1744_v29 }
  0xb0   : > { %v500_v34 = vsel %vm499_vm7, %v2165_v33, %v2166_v32  ;;  %v507_v35 = vsel %vm506_vm8, %v2170_v31, %v2171_v30  ;;  %v1792_v31 = vpack.c.bf16 %v295_v24, %v293_v23 }
  0xb1   : > { %v2179_v36 = vpop.permute.xlu1 %2178  ;;  %v2174_v37 = vpop.permute.xlu0 %2173  ;;  %v1746_v38 = vpack.c.bf16 %v507_v35, %v500_v34  ;;  %v292_v35 = vld [vmem:[%s3511_s5] sm:$0xff] }
  0xb2   : > { %v2181_v39 = vunpack.i.h.bf16 %v2179_v36  ;;  %v2180_v40 = vunpack.i.l.bf16 %v2179_v36  ;;  %v2176_v41 = vunpack.i.h.bf16 %v2174_v37  ;;  %v2175_v42 = vunpack.i.l.bf16 %v2174_v37  ;;  %v294_v36 = vld [vmem:[%s3511_s5 + $0x10] sm:$0xff] }
  0xb3   : > { %1747 = vmatpush1.bf16.msra.mxu0 %v1746_v38 }
  0xb4   : > { %v614_v43 = vsel %vm513_vm9, %v2175_v42, %v2176_v41  ;;  %v620_v44 = vsel %vm520_vm10, %v2180_v40, %v2181_v39  ;;  %v297_v41 = vld [vmem:[%s3511_s5 + $0x28] sm:$0xff]  ;;  %v299_v42 = vld [vmem:[%s3511_s5 + $0x38] sm:$0xff] }
  0xb5   : > { %v2189_v45 = vpop.permute.xlu1 %2188  ;;  %v2184_v46 = vpop.permute.xlu0 %2183  ;;  %v1748_v47 = vpack.c.bf16 %v620_v44, %v614_v43  ;;  %v2879_v43 = vld [vmem:[%s3507_s1] sm:$0xff] }
  0xb6   : > { %v2191_v48 = vunpack.i.h.bf16 %v2189_v45  ;;  %v2190_v49 = vunpack.i.l.bf16 %v2189_v45  ;;  %v2186_v50 = vunpack.i.h.bf16 %v2184_v46  ;;  %v2185_v51 = vunpack.i.l.bf16 %v2184_v46 }
  0xb7   : > { %1749 = vmatprep.subr.bf16.mxu0 %v1748_v47  ;;  %v1794_v46 = vpack.c.bf16 %v294_v36, %v292_v35  ;;  %v308_v35 = vld [vmem:[%s3511_s5 + $0x80] sm:$0xff]  ;;  %v310_v36 = vld [vmem:[%s3511_s5 + $0x90] sm:$0xff] }
  0xb8   : > { %v514_v52 = vsel %vm513_vm9, %v2185_v51, %v2186_v50  ;;  %v521_v53 = vsel %vm520_vm10, %v2190_v49, %v2191_v48  ;;  %v1796_v51 = vpack.c.bf16 %v299_v42, %v297_v41  ;;  %v313_v41 = vld [vmem:[%s3511_s5 + $0xa8] sm:$0xff]  ;;  %v315_v42 = vld [vmem:[%s3511_s5 + $0xb8] sm:$0xff] }
  0xb9   : > { %v2199_v54 = vpop.permute.xlu1 %2198  ;;  %v2194_v55 = vpop.permute.xlu0 %2193  ;;  %v1750_v56 = vpack.c.bf16 %v521_v53, %v514_v52  ;;  %v296_v52 = vld [vmem:[%s3511_s5 + $0x20] sm:$0xff]  ;;  %v298_v53 = vld [vmem:[%s3511_s5 + $0x30] sm:$0xff] }
  0xba   : > { %v2201_v57 = vunpack.i.h.bf16 %v2199_v54  ;;  %v2200_v58 = vunpack.i.l.bf16 %v2199_v54  ;;  %v2196_v59 = vunpack.i.h.bf16 %v2194_v55  ;;  %v2195_v60 = vunpack.i.l.bf16 %v2194_v55 }
  0xbb   : > { %1751 = vmatpush1.bf16.msra.mxu0 %v1750_v56 }
  0xbc   : > { %v626_v61 = vsel %vm527_vm11, %v2195_v60, %v2196_v59  ;;  %v632_v62 = vsel %vm3542_vm12, %v2200_v58, %v2201_v57  ;;  %v2902_v58 = vld [vmem:[%s3507_s1 + $0x8] sm:$0xff] }
  0xbd   : > { %v2209_v63 = vpop.permute.xlu1 %2208  ;;  %v2204_v0 = vpop.permute.xlu0 %2203  ;;  %v1752_v1 = vpack.c.bf16 %v632_v62, %v626_v61  ;;  %v1798_v61 = vpack.c.bf16 %v298_v53, %v296_v52  ;;  %v314_v52 = vld [vmem:[%s3511_s5 + $0xb0] sm:$0xff] }
  0xbe   : > { %v2211_v2 = vunpack.i.h.bf16 %v2209_v63  ;;  %v2210_v3 = vunpack.i.l.bf16 %v2209_v63  ;;  %v2206_v4 = vunpack.i.h.bf16 %v2204_v0  ;;  %v2205_v5 = vunpack.i.l.bf16 %v2204_v0 }
  0xbf   : > { %1753 = vmatprep.subr.bf16.mxu0 %v1752_v1 }
  0xc0   : > { %v528_v8 = vsel %vm527_vm11, %v2205_v5, %v2206_v4  ;;  %v535_v10 = vsel %vm3542_vm12, %v2210_v3, %v2211_v2  ;;  %v300_v2 = vld [vmem:[%s3511_s5 + $0x40] sm:$0xff]  ;;  %v302_v3 = vld [vmem:[%s3511_s5 + $0x50] sm:$0xff] }
  0xc1   : > { %v2219_v11 = vpop.permute.xlu1 %2218  ;;  %v2214_v12 = vpop.permute.xlu0 %2213  ;;  %v1754_v13 = vpack.c.bf16 %v535_v10, %v528_v8 }
  0xc2   : > { %v2221_v14 = vunpack.i.h.bf16 %v2219_v11  ;;  %v2220_v15 = vunpack.i.l.bf16 %v2219_v11  ;;  %v2216_v16 = vunpack.i.h.bf16 %v2214_v12  ;;  %v2215_v17 = vunpack.i.l.bf16 %v2214_v12  ;;  %v305_v11 = vld [vmem:[%s3511_s5 + $0x68] sm:$0xff]  ;;  %v307_v12 = vld [vmem:[%s3511_s5 + $0x78] sm:$0xff] }
  0xc3   : > { %1755 = vmatpush1.bf16.msra.mxu0 %v1754_v13 }
  0xc4   : > { %v638_v18 = vsel %vm3541_vm13, %v2215_v17, %v2216_v16  ;;  %v644_v19 = vsel %vm3540_vm14, %v2220_v15, %v2221_v14  ;;  %v1802_v15 = vpack.c.bf16 %v302_v3, %v300_v2  ;;  %v318_v2 = vld [vmem:[%s3511_s5 + $0xd0] sm:$0xff] }
  0xc5   : > { %v2229_v20 = vpop.permute.xlu1 %2228  ;;  %v2224_v21 = vpop.permute.xlu0 %2223  ;;  %v1756_v22 = vpack.c.bf16 %v644_v19, %v638_v18  ;;  %v1804_v19 = vpack.c.bf16 %v307_v12, %v305_v11  ;;  %v323_v11 = vld [vmem:[%s3511_s5 + $0xf8] sm:$0xff] }
  0xc6   : > { %v2231_v25 = vunpack.i.h.bf16 %v2229_v20  ;;  %v2230_v26 = vunpack.i.l.bf16 %v2229_v20  ;;  %v2226_v27 = vunpack.i.h.bf16 %v2224_v21  ;;  %v2225_v28 = vunpack.i.l.bf16 %v2224_v21  ;;  %v304_v20 = vld [vmem:[%s3511_s5 + $0x60] sm:$0xff]  ;;  %v306_v21 = vld [vmem:[%s3511_s5 + $0x70] sm:$0xff] }
  0xc7   : > { %1757 = vmatprep.subr.bf16.mxu0 %v1756_v22 }
  0xc8   : > { %v542_v29 = vsel %vm3541_vm13, %v2225_v28, %v2226_v27  ;;  %v549_v30 = vsel %vm3540_vm14, %v2230_v26, %v2231_v25  ;;  %v309_v26 = vld [vmem:[%s3511_s5 + $0x88] sm:$0xff]  ;;  %v311_v27 = vld [vmem:[%s3511_s5 + $0x98] sm:$0xff] }
  0xc9   : > { %v2239_v32 = vpop.permute.xlu1 %2238  ;;  %v2234_v33 = vpop.permute.xlu0 %2233  ;;  %v1758_v34 = vpack.c.bf16 %v549_v30, %v542_v29  ;;  %v1806_v30 = vpack.c.bf16 %v306_v21, %v304_v20  ;;  %v322_v20 = vld [vmem:[%s3511_s5 + $0xf0] sm:$0xff] }
  0xca   : > { %v2241_v37 = vunpack.i.h.bf16 %v2239_v32  ;;  %v2240_v38 = vunpack.i.l.bf16 %v2239_v32  ;;  %v2236_v39 = vunpack.i.h.bf16 %v2234_v33  ;;  %v2235_v40 = vunpack.i.l.bf16 %v2234_v33 }
  0xcb   : > { %1759 = vmatpush1.bf16.msra.mxu0 %v1758_v34  ;;  %v1808_v34 = vpack.c.bf16 %v311_v27, %v309_v26  ;;  %v327_v26 = vld [vmem:[%s3511_s5 + $0x118] sm:$0xff] }
  0xcc   : > { %v750_v44 = vsel %vm450_vm0, %v2235_v40, %v2236_v39  ;;  %v655_v45 = vsel %vm450_vm0, %v2240_v38, %v2241_v37  ;;  %1793 = vmatprep.subr.bf16.mxu0 %v1792_v31 }
  0xcd   : > { %v2249_v47 = vpop.permute.xlu1 %2248  ;;  %v2244_v48 = vpop.permute.xlu0 %2243  ;;  %v1760_v49 = vpack.c.bf16 %v750_v44, %v2783_v9  ;;  %v1762_v50 = vpack.c.bf16 %v655_v45, %v2779_v7  ;;  %v301_v9 = vld [vmem:[%s3511_s5 + $0x48] sm:$0xff]  ;;  %v303_v7 = vld [vmem:[%s3511_s5 + $0x58] sm:$0xff] }
  0xce   : > { %v2251_v54 = vunpack.i.h.bf16 %v2249_v47  ;;  %v2250_v55 = vunpack.i.l.bf16 %v2249_v47  ;;  %v2246_v56 = vunpack.i.h.bf16 %v2244_v48  ;;  %v2245_v57 = vunpack.i.l.bf16 %v2244_v48  ;;  %911 = vmatmul.mubr.f32.vlgmr.msra.gmra.mrb[0].mxu0 %v2879_v43 }
  0xcf   : > { %1761 = vmatprep.subr.bf16.mxu1 %v1760_v49  ;;  %916 = vmatprep.mubr.f32.mxu0 %v2635_v6  ;;  %v1800_v1 = vpack.c.bf16 %v303_v7, %v301_v9  ;;  %v319_v9 = vld [vmem:[%s3511_s5 + $0xd8] sm:$0xff] }
  0xd0   : > { %1763 = vmatpush1.bf16.msra.mxu1 %v1762_v50  ;;  %v756_v59 = vsel %vm457_vm1, %v2245_v57, %v2246_v56  ;;  %v762_v60 = vsel %vm464_vm2, %v2250_v55, %v2251_v54  ;;  %1795 = vmatpush1.bf16.msra.mxu0 %v1794_v46  ;;  %v1810_v46 = vpack.c.bf16 %v310_v36, %v308_v35  ;;  %v317_v57 = vld [vmem:[%s3511_s5 + $0xc8] sm:$0xff]  ;;  %v326_v35 = vld [vmem:[%s3511_s5 + $0x110] sm:$0xff] }
  0xd1   : > { %v2259_v62 = vpop.permute.xlu1 %2258  ;;  %v2254_v63 = vpop.permute.xlu0 %2253  ;;  %v1764_v0 = vpack.c.bf16 %v762_v60, %v756_v59  ;;  %1797 = vmatprep.subr.bf16.mxu0 %v1796_v51  ;;  %v1812_v50 = vpack.c.bf16 %v315_v42, %v313_v41  ;;  %v312_v51 = vld [vmem:[%s3511_s5 + $0xa0] sm:$0xff]  ;;  %v331_v41 = vld [vmem:[%s3511_s5 + $0x138] sm:$0xff] }
  0xd2   : > { %v2261_v4 = vunpack.i.h.bf16 %v2259_v62  ;;  %v2260_v5 = vunpack.i.l.bf16 %v2259_v62  ;;  %v2256_v8 = vunpack.i.h.bf16 %v2254_v63  ;;  %v2255_v10 = vunpack.i.l.bf16 %v2254_v63  ;;  %917 = vmatmul.mubr.f32.gmra.mrb[2].mxu0 %v2902_v58 }
  0xd3   : > { %1765 = vmatprep.subr.bf16.mxu1 %v1764_v0  ;;  %v1814_v60 = vpack.c.bf16 %v314_v52, %v312_v51  ;;  %v1816_v0 = vpack.c.bf16 %v319_v9, %v317_v57  ;;  %v330_v51 = vld [vmem:[%s3511_s5 + $0x130] sm:$0xff]  ;;  %v335_v57 = vld [vmem:[%s3511_s5 + $0x158] sm:$0xff] }
  0xd4   : > { %v661_v13 = vsel %vm457_vm1, %v2255_v10, %v2256_v8  ;;  %v667_v14 = vsel %vm464_vm2, %v2260_v5, %v2261_v4  ;;  %1799 = vmatpush1.bf16.msra.mxu0 %v1798_v61  ;;  %v321_v10 = vld [vmem:[%s3511_s5 + $0xe8] sm:$0xff] }
  0xd5   : > { %v2269_v16 = vpop.permute.xlu1 %2268  ;;  %v2264_v17 = vpop.permute.xlu0 %2263  ;;  %v1766_v18 = vpack.c.bf16 %v667_v14, %v661_v13  ;;  %1801 = vmatprep.subr.bf16.mxu0 %v1800_v1  ;;  %v316_v1 = vld [vmem:[%s3511_s5 + $0xc0] sm:$0xff] }
  0xd6   : > { %v2271_v22 = vunpack.i.h.bf16 %v2269_v16  ;;  %v2270_v23 = vunpack.i.l.bf16 %v2269_v16  ;;  %v2266_v24 = vunpack.i.h.bf16 %v2264_v17  ;;  %v2265_v25 = vunpack.i.l.bf16 %v2264_v17 }
  0xd7   : > { %1767 = vmatpush1.bf16.msra.mxu1 %v1766_v18  ;;  %v1818_v14 = vpack.c.bf16 %v318_v2, %v316_v1  ;;  %v1820_v18 = vpack.c.bf16 %v323_v11, %v321_v10  ;;  %v334_v1 = vld [vmem:[%s3511_s5 + $0x150] sm:$0xff] }
  0xd8   : > { %v768_v28 = vsel %vm471_vm3, %v2265_v25, %v2266_v24  ;;  %v774_v29 = vsel %vm478_vm4, %v2270_v23, %v2271_v22  ;;  %1803 = vmatpush1.bf16.msra.mxu0 %v1802_v15  ;;  %v325_v25 = vld [vmem:[%s3511_s5 + $0x108] sm:$0xff] }
  0xd9   : > { %v2279_v31 = vpop.permute.xlu1 %2278  ;;  %v2274_v32 = vpop.permute.xlu0 %2273  ;;  %v1768_v33 = vpack.c.bf16 %v774_v29, %v768_v28  ;;  %1805 = vmatprep.subr.bf16.mxu0 %v1804_v19  ;;  %v320_v19 = vld [vmem:[%s3511_s5 + $0xe0] sm:$0xff] }
  0xda   : > { %v2281_v37 = vunpack.i.h.bf16 %v2279_v31  ;;  %v2280_v38 = vunpack.i.l.bf16 %v2279_v31  ;;  %v2276_v39 = vunpack.i.h.bf16 %v2274_v32  ;;  %v2275_v40 = vunpack.i.l.bf16 %v2274_v32 }
  0xdb   : > { %1769 = vmatprep.subr.bf16.mxu1 %v1768_v33  ;;  %v1822_v29 = vpack.c.bf16 %v322_v20, %v320_v19  ;;  %v1824_v33 = vpack.c.bf16 %v327_v26, %v325_v25 }
  0xdc   : > { %v673_v44 = vsel %vm471_vm3, %v2275_v40, %v2276_v39  ;;  %v679_v45 = vsel %vm478_vm4, %v2280_v38, %v2281_v37  ;;  %1807 = vmatpush1.bf16.msra.mxu0 %v1806_v30  ;;  %v329_v40 = vld [vmem:[%s3511_s5 + $0x128] sm:$0xff] }
  0xdd   : > { %v2289_v47 = vpop.permute.xlu1 %2288  ;;  %v2284_v48 = vpop.permute.xlu0 %2283  ;;  %v1770_v49 = vpack.c.bf16 %v679_v45, %v673_v44  ;;  %1809 = vmatprep.subr.bf16.mxu0 %v1808_v34  ;;  %v324_v34 = vld [vmem:[%s3511_s5 + $0x100] sm:$0xff] }
  0xde   : > { %v2291_v53 = vunpack.i.h.bf16 %v2289_v47  ;;  %v2290_v54 = vunpack.i.l.bf16 %v2289_v47  ;;  %v2286_v55 = vunpack.i.h.bf16 %v2284_v48  ;;  %v2285_v56 = vunpack.i.l.bf16 %v2284_v48 }
  0xdf   : > { %1771 = vmatpush1.bf16.msra.mxu1 %v1770_v49  ;;  %v1826_v45 = vpack.c.bf16 %v326_v35, %v324_v34  ;;  %v1828_v49 = vpack.c.bf16 %v331_v41, %v329_v40 }
  0xe0   : > { %v780_v7 = vsel %vm485_vm5, %v2285_v56, %v2286_v55  ;;  %v786_v59 = vsel %vm492_vm6, %v2290_v54, %v2291_v53  ;;  %1811 = vmatpush1.bf16.msra.mxu0 %v1810_v46  ;;  %v333_v56 = vld [vmem:[%s3511_s5 + $0x148] sm:$0xff] }
  0xe1   : > { %v2299_v61 = vpop.permute.xlu1 %2298  ;;  %v2294_v62 = vpop.permute.xlu0 %2293  ;;  %v1772_v63 = vpack.c.bf16 %v786_v59, %v780_v7  ;;  %1813 = vmatprep.subr.bf16.mxu0 %v1812_v50  ;;  %v328_v50 = vld [vmem:[%s3511_s5 + $0x120] sm:$0xff] }
  0xe2   : > { %v2301_v3 = vunpack.i.h.bf16 %v2299_v61  ;;  %v2300_v4 = vunpack.i.l.bf16 %v2299_v61  ;;  %v2296_v5 = vunpack.i.h.bf16 %v2294_v62  ;;  %v2295_v8 = vunpack.i.l.bf16 %v2294_v62 }
  0xe3   : > { %1773 = vmatprep.subr.bf16.mxu1 %v1772_v63  ;;  %v1830_v59 = vpack.c.bf16 %v330_v51, %v328_v50  ;;  %v1832_v63 = vpack.c.bf16 %v335_v57, %v333_v56  ;;  %v337_v50 = vld [vmem:[%s3511_s5 + $0x168] sm:$0xff]  ;;  %v339_v51 = vld [vmem:[%s3511_s5 + $0x178] sm:$0xff]  ;;  %v340_v56 = vld [vmem:[%s3511_s5 + $0x180] sm:$0xff] }
  0xe4   : > { %v685_v12 = vsel %vm485_vm5, %v2295_v8, %v2296_v5  ;;  %v691_v13 = vsel %vm492_vm6, %v2300_v4, %v2301_v3  ;;  %1815 = vmatpush1.bf16.msra.mxu0 %v1814_v60  ;;  %v342_v57 = vld [vmem:[%s3511_s5 + $0x190] sm:$0xff] }
  0xe5   : > { %v2309_v15 = vpop.permute.xlu1 %2308  ;;  %v2304_v16 = vpop.permute.xlu0 %2303  ;;  %v1774_v17 = vpack.c.bf16 %v691_v13, %v685_v12  ;;  %1817 = vmatprep.subr.bf16.mxu0 %v1816_v0  ;;  %v332_v0 = vld [vmem:[%s3511_s5 + $0x140] sm:$0xff] }
  0xe6   : > { %v2311_v21 = vunpack.i.h.bf16 %v2309_v15  ;;  %v2310_v22 = vunpack.i.l.bf16 %v2309_v15  ;;  %v2306_v23 = vunpack.i.h.bf16 %v2304_v16  ;;  %v2305_v24 = vunpack.i.l.bf16 %v2304_v16 }
  0xe7   : > { %1775 = vmatpush1.bf16.msra.mxu1 %v1774_v17  ;;  %v1834_v11 = vpack.c.bf16 %v334_v1, %v332_v0  ;;  %v349_v0 = vld [vmem:[%s3511_s5 + $0x1c8] sm:$0xff]  ;;  %v351_v1 = vld [vmem:[%s3511_s5 + $0x1d8] sm:$0xff] }
  0xe8   : > { %v792_v27 = vsel %vm499_vm7, %v2305_v24, %v2306_v23  ;;  %v798_v28 = vsel %vm506_vm8, %v2310_v22, %v2311_v21  ;;  %1819 = vmatpush1.bf16.msra.mxu0 %v1818_v14 }
  0xe9   : > { %v2319_v30 = vpop.permute.xlu1 %2318  ;;  %v2314_v31 = vpop.permute.xlu0 %2313  ;;  %v1776_v32 = vpack.c.bf16 %v798_v28, %v792_v27  ;;  %1821 = vmatprep.subr.bf16.mxu0 %v1820_v18 }
  0xea   : > { %v2321_v36 = vunpack.i.h.bf16 %v2319_v30  ;;  %v2320_v37 = vunpack.i.l.bf16 %v2319_v30  ;;  %v2316_v38 = vunpack.i.h.bf16 %v2314_v31  ;;  %v2315_v39 = vunpack.i.l.bf16 %v2314_v31 }
  0xeb   : > { %1777 = vmatprep.subr.bf16.mxu1 %v1776_v32 }
  0xec   : > { %v697_v42 = vsel %vm499_vm7, %v2315_v39, %v2316_v38  ;;  %v703_v44 = vsel %vm506_vm8, %v2320_v37, %v2321_v36  ;;  %1823 = vmatpush1.bf16.msra.mxu0 %v1822_v29 }
  0xed   : > { %v2329_v46 = vpop.permute.xlu1 %2328  ;;  %v2324_v47 = vpop.permute.xlu0 %2323  ;;  %v1778_v48 = vpack.c.bf16 %v703_v44, %v697_v42  ;;  %1825 = vmatprep.subr.bf16.mxu0 %v1824_v33 }
  0xee   : > { %v2331_v52 = vunpack.i.h.bf16 %v2329_v46  ;;  %v2330_v53 = vunpack.i.l.bf16 %v2329_v46  ;;  %v2326_v54 = vunpack.i.h.bf16 %v2324_v47  ;;  %v2325_v55 = vunpack.i.l.bf16 %v2324_v47 }
  0xef   : > { %1779 = vmatpush1.bf16.msra.mxu1 %v1778_v48 }
  0xf0   : > { %v804_v9 = vsel %vm513_vm9, %v2325_v55, %v2326_v54  ;;  %v810_v7 = vsel %vm520_vm10, %v2330_v53, %v2331_v52  ;;  %1827 = vmatpush1.bf16.msra.mxu0 %v1826_v45  ;;  %v1836_v52 = vpack.c.bf16 %v339_v51, %v337_v50  ;;  %v336_v53 = vld [vmem:[%s3511_s5 + $0x160] sm:$0xff]  ;;  %v343_v54 = vld [vmem:[%s3511_s5 + $0x198] sm:$0xff]  ;;  %v362_v50 = vld [vmem:[%s3511_s5 + $0x230] sm:$0xff] }
  0xf1   : > { %v2339_v60 = vpop.permute.xlu1 %2338  ;;  %v2334_v61 = vpop.permute.xlu0 %2333  ;;  %v1780_v62 = vpack.c.bf16 %v810_v7, %v804_v9  ;;  %1829 = vmatprep.subr.bf16.mxu0 %v1828_v49  ;;  %v1842_v9 = vpack.c.bf16 %v342_v57, %v340_v56  ;;  %v345_v7 = vld [vmem:[%s3511_s5 + $0x1a8] sm:$0xff]  ;;  %v364_v57 = vld [vmem:[%s3511_s5 + $0x240] sm:$0xff] }
  0xf2   : > { %v2341_v2 = vunpack.i.h.bf16 %v2339_v60  ;;  %v2340_v3 = vunpack.i.l.bf16 %v2339_v60  ;;  %v2336_v4 = vunpack.i.h.bf16 %v2334_v61  ;;  %v2335_v5 = vunpack.i.l.bf16 %v2334_v61  ;;  %v344_v61 = vld [vmem:[%s3511_s5 + $0x1a0] sm:$0xff] }
  0xf3   : > { %1781 = vmatprep.subr.bf16.mxu1 %v1780_v62  ;;  %v346_v62 = vld [vmem:[%s3511_s5 + $0x1b0] sm:$0xff] }
  0xf4   : > { %v709_v8 = vsel %vm513_vm9, %v2335_v5, %v2336_v4  ;;  %v715_v10 = vsel %vm520_vm10, %v2340_v3, %v2341_v2  ;;  %1831 = vmatpush1.bf16.msra.mxu0 %v1830_v59  ;;  %v347_v59 = vld [vmem:[%s3511_s5 + $0x1b8] sm:$0xff]  ;;  %v1848_v2 = vpack.c.bf16 %v351_v1, %v349_v0  ;;  %v348_v3 = vld [vmem:[%s3511_s5 + $0x1c0] sm:$0xff]  ;;  %v350_v4 = vld [vmem:[%s3511_s5 + $0x1d0] sm:$0xff] }
  0xf5   : > { %v2349_v12 = vpop.permute.xlu1 %2348  ;;  %v2344_v13 = vpop.permute.xlu0 %2343  ;;  %v1782_v14 = vpack.c.bf16 %v715_v10, %v709_v8  ;;  %1833 = vmatprep.subr.bf16.mxu0 %v1832_v63  ;;  %v1844_v60 = vpack.c.bf16 %v347_v59, %v345_v7  ;;  %v1846_v63 = vpack.c.bf16 %v346_v62, %v344_v61  ;;  %v1850_v5 = vpack.c.bf16 %v350_v4, %v348_v3  ;;  %v353_v8 = vld [vmem:[%s3511_s5 + $0x1e8] sm:$0xff]  ;;  %v355_v10 = vld [vmem:[%s3511_s5 + $0x1f8] sm:$0xff]  ;;  %v370_v0 = vld [vmem:[%s3511_s5 + $0x270] sm:$0xff] }
  0xf6   : > { %v2351_v15 = vunpack.i.h.bf16 %v2349_v12  ;;  %v2350_v16 = vunpack.i.l.bf16 %v2349_v12  ;;  %v2346_v17 = vunpack.i.h.bf16 %v2344_v13  ;;  %v2345_v18 = vunpack.i.l.bf16 %v2344_v13  ;;  %v352_v12 = vld [vmem:[%s3511_s5 + $0x1e0] sm:$0xff]  ;;  %v354_v13 = vld [vmem:[%s3511_s5 + $0x1f0] sm:$0xff]  ;;  %v369_v59 = vld [vmem:[%s3511_s5 + $0x268] sm:$0xff] }
  0xf7   : > { %1783 = vmatpush1.bf16.msra.mxu1 %v1782_v14  ;;  %v1854_v14 = vpack.c.bf16 %v354_v13, %v352_v12  ;;  %v373_v1 = vld [vmem:[%s3511_s5 + $0x288] sm:$0xff] }
  0xf8   : > { %v816_v19 = vsel %vm527_vm11, %v2345_v18, %v2346_v17  ;;  %v822_v20 = vsel %vm3542_vm12, %v2350_v16, %v2351_v15  ;;  %1835 = vmatpush1.bf16.msra.mxu0 %v1834_v11  ;;  %v1852_v11 = vpack.c.bf16 %v355_v10, %v353_v8  ;;  %v357_v15 = vld [vmem:[%s3511_s5 + $0x208] sm:$0xff]  ;;  %v359_v16 = vld [vmem:[%s3511_s5 + $0x218] sm:$0xff]  ;;  %v374_v8 = vld [vmem:[%s3511_s5 + $0x290] sm:$0xff] }
  0xf9   : > { %v2359_v21 = vpop.permute.xlu1 %2358  ;;  %v2354_v22 = vpop.permute.xlu0 %2353  ;;  %v1784_v23 = vpack.c.bf16 %v822_v20, %v816_v19  ;;  %1837 = vmatprep.subr.bf16.mxu0 %v1836_v52  ;;  %v1856_v17 = vpack.c.bf16 %v359_v16, %v357_v15  ;;  %v377_v10 = vld [vmem:[%s3511_s5 + $0x2a8] sm:$0xff]  ;;  %v378_v15 = vld [vmem:[%s3511_s5 + $0x2b0] sm:$0xff] }
  0xfa   : > { %v2361_v24 = vunpack.i.h.bf16 %v2359_v21  ;;  %v2360_v25 = vunpack.i.l.bf16 %v2359_v21  ;;  %v2356_v26 = vunpack.i.h.bf16 %v2354_v22  ;;  %v2355_v27 = vunpack.i.l.bf16 %v2354_v22  ;;  %v381_v16 = vld [vmem:[%s3511_s5 + $0x2c8] sm:$0xff] }
  0xfb   : > { %1785 = vmatprep.subr.bf16.mxu1 %v1784_v23 }
  0xfc   : > { %v721_v28 = vsel %vm527_vm11, %v2355_v27, %v2356_v26  ;;  %v727_v29 = vsel %vm3542_vm12, %v2360_v25, %v2361_v24 }
  0xfd   : > { %v2369_v30 = vpop.permute.xlu1 %2368  ;;  %v2364_v31 = vpop.permute.xlu0 %2363  ;;  %v1786_v32 = vpack.c.bf16 %v727_v29, %v721_v28 }
  0xfe   : > { %v2371_v33 = vunpack.i.h.bf16 %v2369_v30  ;;  %v2370_v34 = vunpack.i.l.bf16 %v2369_v30  ;;  %v2366_v35 = vunpack.i.h.bf16 %v2364_v31  ;;  %v2365_v36 = vunpack.i.l.bf16 %v2364_v31 }
  0xff   : > { %1787 = vmatpush1.bf16.msra.mxu1 %v1786_v32 }
 0x100   : > { %v828_v37 = vsel %vm3541_vm13, %v2365_v36, %v2366_v35  ;;  %v834_v38 = vsel %vm3540_vm14, %v2370_v34, %v2371_v33 }
 0x101   : > { %v2379_v39 = vpop.permute.xlu1 %2378  ;;  %v2374_v40 = vpop.permute.xlu0 %2373  ;;  %v1788_v41 = vpack.c.bf16 %v834_v38, %v828_v37  ;;  %v356_v37 = vld [vmem:[%s3511_s5 + $0x200] sm:$0xff]  ;;  %v358_v38 = vld [vmem:[%s3511_s5 + $0x210] sm:$0xff] }
 0x102   : > { %v2381_v42 = vunpack.i.h.bf16 %v2379_v39  ;;  %v2380_v44 = vunpack.i.l.bf16 %v2379_v39  ;;  %v2376_v45 = vunpack.i.h.bf16 %v2374_v40  ;;  %v2375_v46 = vunpack.i.l.bf16 %v2374_v40 }
 0x103   : > { %1789 = vmatprep.subr.bf16.mxu1 %v1788_v41  ;;  %v361_v41 = vld [vmem:[%s3511_s5 + $0x228] sm:$0xff] }
 0x104   : > { %v733_v47 = vsel %vm3541_vm13, %v2375_v46, %v2376_v45  ;;  %v739_v48 = vsel %vm3540_vm14, %v2380_v44, %v2381_v42  ;;  %v363_v42 = vld [vmem:[%s3511_s5 + $0x238] sm:$0xff]  ;;  %v1858_v45 = vpack.c.bf16 %v358_v38, %v356_v37 }
 0x105   : > { %v1790_v49 = vpack.c.bf16 %v739_v48, %v733_v47  ;;  %v1860_v48 = vpack.c.bf16 %v363_v42, %v361_v41  ;;  %v395_v37 = vld [vmem:[%s3511_s5 + $0x338] sm:$0xff]  ;;  %v394_v41 = vld [vmem:[%s3511_s5 + $0x330] sm:$0xff]  ;;  %v397_v42 = vld [vmem:[%s3511_s5 + $0x348] sm:$0xff] }
 0x107   : > { %1791 = vmatpush1.bf16.msra.mxu1 %v1790_v49  ;;  %v360_v49 = vld [vmem:[%s3511_s5 + $0x220] sm:$0xff] }
 0x10a   : > { %988 = vmatmul.mubr.f32.vlgmr.msra.gmra.mrb[0].mxu1 %v2879_v43  ;;  %v338_v43 = vld [vmem:[%s3511_s5 + $0x170] sm:$0xff] }
 0x10b   : > { %993 = vmatprep.mubr.f32.mxu1 %v2635_v6  ;;  %v1838_v6 = vpack.c.bf16 %v338_v43, %v336_v53  ;;  %v365_v53 = vld [vmem:[%s3511_s5 + $0x248] sm:$0xff]  ;;  %v367_v43 = vld [vmem:[%s3511_s5 + $0x258] sm:$0xff] }
 0x10c   : > { %v1864_v56 = vpack.c.bf16 %v367_v43, %v365_v53 }
 0x10d   : > { %1839 = vmatpush1.bf16.msra.mxu0 %v1838_v6 }
 0x10e   : > { %994 = vmatmul.mubr.f32.gmra.mrb[2].mxu1 %v2902_v58  ;;  %v341_v58 = vld [vmem:[%s3511_s5 + $0x188] sm:$0xff] }
 0x10f   : > { %v1840_v55 = vpack.c.bf16 %v343_v54, %v341_v58  ;;  %v1862_v54 = vpack.c.bf16 %v362_v50, %v360_v49  ;;  %v401_v49 = vld [vmem:[%s3511_s5 + $0x368] sm:$0xff]  ;;  %v403_v50 = vld [vmem:[%s3511_s5 + $0x378] sm:$0xff] }
 0x111   : > { %1841 = vmatprep.subr.bf16.mxu0 %v1840_v55 }
 0x112   : > { %1843 = vmatpush1.bf16.msra.mxu0 %v1842_v9  ;;  %v3104_v18 = vpop.permute.xlu0 %838  ;;  %v366_v9 = vld [vmem:[%s3511_s5 + $0x250] sm:$0xff] }
 0x113   : > { %1845 = vmatprep.subr.bf16.mxu0 %v1844_v60  ;;  %v3108_v23 = vpop.permute.xlu1 %843  ;;  %v371_v60 = vld [vmem:[%s3511_s5 + $0x278] sm:$0xff]  ;;  %v1866_v61 = vpack.c.bf16 %v366_v9, %v364_v57 }
 0x114   : > { %v1868_v62 = vpack.c.bf16 %v371_v60, %v369_v59  ;;  %v407_v57 = vld [vmem:[%s3511_s5 + $0x398] sm:$0xff] }
 0x116   : > { %1847 = vmatpush1.bf16.msra.mxu0 %v1846_v63  ;;  %v368_v63 = vld [vmem:[%s3511_s5 + $0x260] sm:$0xff] }
 0x117   : > { %1849 = vmatprep.subr.bf16.mxu0 %v1848_v2  ;;  %v375_v2 = vld [vmem:[%s3511_s5 + $0x298] sm:$0xff]  ;;  %v1870_v3 = vpack.c.bf16 %v370_v0, %v368_v63  ;;  %v404_v0 = vld [vmem:[%s3511_s5 + $0x380] sm:$0xff] }
 0x118   : > { %v1872_v4 = vpack.c.bf16 %v375_v2, %v373_v1  ;;  %v406_v1 = vld [vmem:[%s3511_s5 + $0x390] sm:$0xff] }
 0x11a   : > { %1851 = vmatpush1.bf16.msra.mxu0 %v1850_v5  ;;  %v372_v5 = vld [vmem:[%s3511_s5 + $0x280] sm:$0xff] }
 0x11b   : > { %1853 = vmatprep.subr.bf16.mxu0 %v1852_v11  ;;  %v379_v11 = vld [vmem:[%s3511_s5 + $0x2b8] sm:$0xff]  ;;  %v1874_v12 = vpack.c.bf16 %v374_v8, %v372_v5 }
 0x11c   : > { %v1876_v13 = vpack.c.bf16 %v379_v11, %v377_v10  ;;  %v411_v5 = vld [vmem:[%s3511_s5 + $0x3b8] sm:$0xff]  ;;  %v1906_v11 = vpack.c.bf16 %v406_v1, %v404_v0 }
 0x11e   : > { %1855 = vmatpush1.bf16.msra.mxu0 %v1854_v14  ;;  %v376_v14 = vld [vmem:[%s3511_s5 + $0x2a0] sm:$0xff] }
 0x11f   : > { %1857 = vmatprep.subr.bf16.mxu0 %v1856_v17  ;;  %v383_v17 = vld [vmem:[%s3511_s5 + $0x2d8] sm:$0xff] }
 0x1a1   : > { %v912_v19 = vpop.f32.mrb[0].mxu0 }
 0x1a2   : > { %v913_v20 = vadd.f32 %v912_v19, %v3104_v18  ;;  %v914_v21 = vpop.f32.mrb[1].mxu0  ;;  %v1878_v19 = vpack.c.bf16 %v378_v15, %v376_v14  ;;  %v410_v14 = vld [vmem:[%s3511_s5 + $0x3b0] sm:$0xff] }
 0x1a3   : > { %v915_v22 = vadd.f32 %v914_v21, %v3104_v18  ;;  %v380_v21 = vld [vmem:[%s3511_s5 + $0x2c0] sm:$0xff] }
 0x1a4   : > { %v1008_v24 = vmin.f32 %v913_v20, 0.0  ;;  %vm1000_vm14 = vcmp.gt.f32.partialorder %v913_v20, 0.0 }
 0x1a5   : > { %v1009_v25 = vmin.f32 %v915_v22, 0.0  ;;  %v918_v26 = vpop.f32.mrb[2].mxu0  ;;  %vm1001_vm15 = vcmp.gt.f32.partialorder %v915_v22, 0.0 }
 0x1a6   : > { %v1016_v27 = vmul.f32 1.442695, %v1008_v24  ;;  %v919_v28 = vadd.f32 %v918_v26, %v3108_v23  ;;  %v920_v29 = vpop.f32.mrb[3].mxu0  ;;  %v385_v24 = vld [vmem:[%s3511_s5 + $0x2e8] sm:$0xff] }
 0x1a7   : > { %v1018_v30 = vmul.f32 1.442695, %v1009_v25  ;;  %v921_v31 = vadd.f32 %v920_v29, %v3108_v23  ;;  %v387_v25 = vld [vmem:[%s3511_s5 + $0x2f8] sm:$0xff]  ;;  %v386_v29 = vld [vmem:[%s3511_s5 + $0x2f0] sm:$0xff] }
 0x1a8   : > { %2534 = vpow2.f32 %v1016_v27  ;;  %v1012_v32 = vmin.f32 %v919_v28, 0.0  ;;  %vm1004_vm13 = vcmp.gt.f32.partialorder %v919_v28, 0.0  ;;  %v1884_v27 = vpack.c.bf16 %v387_v25, %v385_v24  ;;  %v417_v24 = vld [vmem:[%s3511_s5 + $0x3e8] sm:$0xff]  ;;  %v419_v25 = vld [vmem:[%s3511_s5 + $0x3f8] sm:$0xff] }
 0x1a9   : > { %2536 = vpow2.f32 %v1018_v30  ;;  %v1013_v33 = vmin.f32 %v921_v31, 0.0  ;;  %v389_v30 = vld [vmem:[%s3511_s5 + $0x308] sm:$0xff] }
 0x1aa   : > { %v1024_v34 = vmul.f32 1.442695, %v1012_v32 }
 0x1ab   : > { %v1026_v35 = vmul.f32 1.442695, %v1013_v33 }
 0x1ac   : > { %2538 = vpow2.f32 %v1024_v34  ;;  %v388_v34 = vld [vmem:[%s3511_s5 + $0x300] sm:$0xff] }
 0x1ad   : > { %2540 = vpow2.f32 %v1026_v35  ;;  %v390_v35 = vld [vmem:[%s3511_s5 + $0x310] sm:$0xff] }
 0x1ae   : > { %v1890_v38 = vpack.c.bf16 %v390_v35, %v388_v34 }
 0x1b2   : > { %v2535_v36 = vpop.eup %2534 }
 0x1b3   : > { %v2537_v39 = vpop.eup %2536  ;;  %v1706_v40 = vadd.f32 -1.0, %v2535_v36  ;;  %v393_v36 = vld [vmem:[%s3511_s5 + $0x328] sm:$0xff] }
 0x1b4   : > { %v1707_v44 = vadd.f32 -1.0, %v2537_v39  ;;  %v1892_v39 = vpack.c.bf16 %v395_v37, %v393_v36 }
 0x1b5   : > { %v1040_v52 = vsel %vm1000_vm14, %v913_v20, %v1706_v40  ;;  %v1880_v20 = vpack.c.bf16 %v383_v17, %v381_v16  ;;  %v392_v40 = vld [vmem:[%s3511_s5 + $0x320] sm:$0xff]  ;;  %v413_v16 = vld [vmem:[%s3511_s5 + $0x3c8] sm:$0xff]  ;;  %v415_v17 = vld [vmem:[%s3511_s5 + $0x3d8] sm:$0xff] }
 0x1b6   : > { %v2539_v46 = vpop.eup %2538  ;;  %v1041_v47 = vsel %vm1001_vm15, %v915_v22, %v1707_v44  ;;  %vm1005_vm15 = vcmp.gt.f32.partialorder %v921_v31, 0.0  ;;  %v382_v22 = vld [vmem:[%s3511_s5 + $0x2d0] sm:$0xff]  ;;  %v399_v44 = vld [vmem:[%s3511_s5 + $0x358] sm:$0xff] }
 0x1b7   : > { %v2541_v51 = vpop.eup %2540  ;;  %1112 = vmatprep.mubr.f32.mxu0 %v1041_v47  ;;  %v1710_v6 = vadd.f32 -1.0, %v2539_v46  ;;  %v1882_v26 = vpack.c.bf16 %v382_v22, %v380_v21  ;;  %v1896_v46 = vpack.c.bf16 %v399_v44, %v397_v42  ;;  %v396_v47 = vld [vmem:[%s3511_s5 + $0x340] sm:$0xff]  ;;  %v414_v22 = vld [vmem:[%s3511_s5 + $0x3d0] sm:$0xff] }
 0x1b8   : > { %1113 = vmatmul.mubr.f32.vlgmr.msra.gmra.mrb[4].mxu0 %v1040_v52  ;;  %v1711_v58 = vadd.f32 -1.0, %v2541_v51  ;;  %v412_v21 = vld [vmem:[%s3511_s5 + $0x3c0] sm:$0xff] }
 0x1b9   : > { %1859 = vmatpush1.bf16.msra.mxu0 %v1858_v45  ;;  %v1044_v55 = vsel %vm1004_vm13, %v919_v28, %v1710_v6  ;;  %v384_v28 = vld [vmem:[%s3511_s5 + $0x2e0] sm:$0xff]  ;;  %v1894_v45 = vpack.c.bf16 %v394_v41, %v392_v40  ;;  %v1900_v6 = vpack.c.bf16 %v403_v50, %v401_v49 }
 0x1ba   : > { %1861 = vmatprep.subr.bf16.mxu0 %v1860_v48  ;;  %v1045_v7 = vsel %vm1005_vm15, %v921_v31, %v1711_v58  ;;  %v391_v31 = vld [vmem:[%s3511_s5 + $0x318] sm:$0xff]  ;;  %v1886_v32 = vpack.c.bf16 %v386_v29, %v384_v28  ;;  %v398_v48 = vld [vmem:[%s3511_s5 + $0x350] sm:$0xff]  ;;  %v400_v58 = vld [vmem:[%s3511_s5 + $0x360] sm:$0xff] }
 0x1bb   : > { %1118 = vmatprep.mubr.f32.mxu0 %v1045_v7  ;;  %v1888_v33 = vpack.c.bf16 %v391_v31, %v389_v30  ;;  %v1898_v52 = vpack.c.bf16 %v398_v48, %v396_v47  ;;  %v416_v28 = vld [vmem:[%s3511_s5 + $0x3e0] sm:$0xff]  ;;  %v418_v29 = vld [vmem:[%s3511_s5 + $0x3f0] sm:$0xff] }
 0x1bc   : > { %1119 = vmatmul.mubr.f32.gmra.mrb[6].mxu0 %v1044_v55 }
 0x1bd   : > { %1863 = vmatpush1.bf16.msra.mxu0 %v1862_v54  ;;  %v402_v54 = vld [vmem:[%s3511_s5 + $0x370] sm:$0xff] }
 0x1be   : > { %1865 = vmatprep.subr.bf16.mxu0 %v1864_v56  ;;  %v405_v56 = vld [vmem:[%s3511_s5 + $0x388] sm:$0xff]  ;;  %v1902_v60 = vpack.c.bf16 %v402_v54, %v400_v58 }
 0x1c1   : > { %1867 = vmatpush1.bf16.msra.mxu0 %v1866_v61 }
 0x1c2   : > { %1869 = vmatprep.subr.bf16.mxu0 %v1868_v62 }
 0x1c5   : > { %1871 = vmatpush1.bf16.msra.mxu0 %v1870_v3 }
 0x1c6   : > { %1873 = vmatprep.subr.bf16.mxu0 %v1872_v4  ;;  %v409_v4 = vld [vmem:[%s3511_s5 + $0x3a8] sm:$0xff] }
 0x1c9   : > { %1875 = vmatpush1.bf16.msra.mxu0 %v1874_v12 }
 0x1ca   : > { %1877 = vmatprep.subr.bf16.mxu0 %v1876_v13  ;;  %v1908_v13 = vpack.c.bf16 %v411_v5, %v409_v4 }
 0x1cd   : > { %1879 = vmatpush1.bf16.msra.mxu0 %v1878_v19 }
 0x1ce   : > { %1881 = vmatprep.subr.bf16.mxu0 %v1880_v20  ;;  %v1912_v20 = vpack.c.bf16 %v415_v17, %v413_v16 }
 0x1d1   : > { %1883 = vmatpush1.bf16.msra.mxu0 %v1882_v26  ;;  %v1914_v26 = vpack.c.bf16 %v414_v22, %v412_v21 }
 0x1d2   : > { %1885 = vmatprep.subr.bf16.mxu0 %v1884_v27  ;;  %v1916_v27 = vpack.c.bf16 %v419_v25, %v417_v24 }
 0x1d5   : > { %1887 = vmatpush1.bf16.msra.mxu0 %v1886_v32 }
 0x1d6   : > { %1889 = vmatprep.subr.bf16.mxu0 %v1888_v33  ;;  %v1918_v33 = vpack.c.bf16 %v418_v29, %v416_v28 }
 0x1d9   : > { %1891 = vmatpush1.bf16.msra.mxu0 %v1890_v38 }
 0x1da   : > { %1893 = vmatprep.subr.bf16.mxu0 %v1892_v39 }
 0x1dd   : > { %1895 = vmatpush1.bf16.msra.mxu0 %v1894_v45  ;;  %v989_v51 = vpop.f32.mrb[0].mxu1 }
 0x1de   : > { %v3245_v53 = vadd.f32 %v989_v51, %v3104_v18  ;;  %v991_v43 = vpop.f32.mrb[1].mxu1  ;;  %1897 = vmatprep.subr.bf16.mxu0 %v1896_v46 }
 0x1df   : > { %v992_v55 = vadd.f32 %v991_v43, %v3104_v18  ;;  %v1904_v18 = vpack.c.bf16 %v407_v57, %v405_v56  ;;  %v291_v43 = vld [vmem:[%s3510_s4 + $0x8] sm:$0xff] }
 0x1e0   : > { %v1010_v9 = vmin.f32 %v3245_v53, 0.0  ;;  %vm1002_vm15 = vcmp.gt.f32.partialorder %v3245_v53, 0.0 }
 0x1e1   : > { %v1011_v7 = vmin.f32 %v992_v55, 0.0  ;;  %1899 = vmatpush1.bf16.msra.mxu0 %v1898_v52  ;;  %v995_v59 = vpop.f32.mrb[2].mxu1  ;;  %vm1003_vm13 = vcmp.gt.f32.partialorder %v992_v55, 0.0  ;;  %v287_v52 = vld [vmem:[%s3509_s3 + $0x8] sm:$0xff] }
 0x1e2   : > { %v1020_v61 = vmul.f32 1.442695, %v1010_v9  ;;  %v3262_v62 = vadd.f32 %v995_v59, %v3108_v23  ;;  %v997_v63 = vpop.f32.mrb[3].mxu1  ;;  %1901 = vmatprep.subr.bf16.mxu0 %v1900_v6  ;;  %1490 = vmatprep.mubr.f32.mxu1 %v287_v52 }
 0x1e3   : > { %v1022_v2 = vmul.f32 1.442695, %v1011_v7  ;;  %v998_v3 = vadd.f32 %v997_v63, %v3108_v23  ;;  %v408_v23 = vld [vmem:[%s3511_s5 + $0x3a0] sm:$0xff] }
 0x1e4   : > { %v1014_v8 = vmin.f32 %v3262_v62, 0.0  ;;  %v1910_v19 = vpack.c.bf16 %v410_v14, %v408_v23  ;;  %vm1006_vm12 = vcmp.gt.f32.partialorder %v3262_v62, 0.0 }
 0x1e5   : > { %2542 = vpow2.f32 %v1022_v2  ;;  %v1015_v10 = vmin.f32 %v998_v3, 0.0  ;;  %1903 = vmatpush1.bf16.msra.mxu0 %v1902_v60  ;;  %vm1007_vm14 = vcmp.gt.f32.partialorder %v998_v3, 0.0 }
 0x1e6   : > { %2544 = vpow2.f32 %v1020_v61  ;;  %v1028_v12 = vmul.f32 1.442695, %v1014_v8  ;;  %1905 = vmatprep.subr.bf16.mxu0 %v1904_v18 }
 0x1e7   : > { %v1030_v15 = vmul.f32 1.442695, %v1015_v10 }
 0x1e9   : > { %2546 = vpow2.f32 %v1030_v15  ;;  %1907 = vmatpush1.bf16.msra.mxu0 %v1906_v11 }
 0x1ea   : > { %2548 = vpow2.f32 %v1028_v12  ;;  %1909 = vmatprep.subr.bf16.mxu0 %v1908_v13 }
 0x1ed   : > { %1911 = vmatpush1.bf16.msra.mxu0 %v1910_v19 }
 0x1ee   : > { %1913 = vmatprep.subr.bf16.mxu0 %v1912_v20 }
 0x1ef   : > { %v2543_v30 = vpop.eup %2542 }
 0x1f0   : > { %v2545_v31 = vpop.eup %2544  ;;  %v1709_v32 = vadd.f32 -1.0, %v2543_v30 }
 0x1f1   : > { %1915 = vmatpush1.bf16.msra.mxu0 %v1914_v26  ;;  %v1708_v36 = vadd.f32 -1.0, %v2545_v31 }
 0x1f2   : > { %1917 = vmatprep.subr.bf16.mxu0 %v1916_v27  ;;  %v1043_v34 = vsel %vm1003_vm13, %v992_v55, %v1709_v32 }
 0x1f3   : > { %v2547_v35 = vpop.eup %2546  ;;  %1189 = vmatprep.mubr.f32.mxu0 %v1043_v34  ;;  %v1042_v40 = vsel %vm1002_vm15, %v3245_v53, %v1708_v36  ;;  %v290_v53 = vld [vmem:[%s3510_s4] sm:$0xff] }
 0x1f4   : > { %v2549_v37 = vpop.eup %2548  ;;  %v1713_v38 = vadd.f32 -1.0, %v2547_v35 }
 0x1f5   : > { %1919 = vmatpush1.bf16.msra.mxu0 %v1918_v33  ;;  %v1712_v41 = vadd.f32 -1.0, %v2549_v37 }
 0x1f6   : > { %v1047_v39 = vsel %vm1007_vm14, %v998_v3, %v1713_v38  ;;  %vm1613_vm14 = vcmask 130048  }
 0x1f7   : > { %v1046_v42 = vsel %vm1006_vm12, %v3262_v62, %v1712_v41 }
 0x1f8   : > { %1190 = vmatmul.mubr.f32.vlgmr.msra.gmra.mrb[4].mxu0 %v1042_v40 }
 0x1f9   : > { %1195 = vmatprep.mubr.f32.mxu0 %v1047_v39 }
 0x1fc   : > { %1196 = vmatmul.mubr.f32.gmra.mrb[6].mxu0 %v1046_v42 }
 0x2cb   : > { %v1191_v44 = vpop.f32.mrb[4].mxu0 }
 0x2cc   : > { %v1193_v45 = vpop.f32.mrb[5].mxu0 }
 0x2cd   : > { %v2384_v46 = vpack.i.bf16 %v1193_v45, %v1191_v44 }
 0x2cf   : > { %2385 = vrot.lane.b32.xlu1 %v2384_v46, %s2623_s19  ;;  %v1197_v47 = vpop.f32.mrb[6].mxu0 }
 0x2d0   : > { %v1199_v48 = vpop.f32.mrb[7].mxu0  ;;  %v1922_v49 = vpack.c.bf16 %v1197_v47, %v1191_v44 }
 0x2d1   : > { %v2459_v50 = vpack.i.bf16 %v1199_v48, %v1197_v47  ;;  %v1920_v51 = vpack.c.bf16 %v1199_v48, %v1193_v45 }
 0x2d3   : > { %2390 = vrot.lane.b32.xlu1 %v2384_v46, %s2622_s18  ;;  %2460 = vrot.lane.b32.xlu0 %v2459_v50, %s2623_s19  ;;  %s3552_s19 = smov 120  }
 0x2d4   : > { %1921 = vmatprep.subr.bf16.mxu1 %v1920_v51 }
 0x2d5   : > { %1923 = vmatpush1.bf16.msra.mxu1 %v1922_v49 }
 0x2d7   : > { %2395 = vrot.lane.b32.xlu1 %v2384_v46, %s3547_s20  ;;  %2465 = vrot.lane.b32.xlu0 %v2459_v50, %s2622_s18  ;;  %s3553_s18 = smov 119  }
 0x2db   : > { %2400 = vrot.lane.b32.xlu1 %v2384_v46, %s3548_s13  ;;  %2470 = vrot.lane.b32.xlu0 %v2459_v50, %s3547_s20  ;;  %s3557_s20 = smov 113  }
 0x2df   : > { %2405 = vrot.lane.b32.xlu1 %v2384_v46, %s3549_s15  ;;  %2475 = vrot.lane.b32.xlu0 %v2459_v50, %s3548_s13 }
 0x2e3   : > { %2410 = vrot.lane.b32.xlu1 %v2384_v46, %s3550_s16  ;;  %2480 = vrot.lane.b32.xlu0 %v2459_v50, %s3549_s15 }
 0x2e7   : > { %2415 = vrot.lane.b32.xlu1 %v2384_v46, %s3551_s14  ;;  %2485 = vrot.lane.b32.xlu0 %v2459_v50, %s3550_s16 }
 0x2eb   : > { %2420 = vrot.lane.b32.xlu1 %v2384_v46, %s3552_s19  ;;  %2490 = vrot.lane.b32.xlu0 %v2459_v50, %s3551_s14 }
 0x2ef   : > { %2425 = vrot.lane.b32.xlu1 %v2384_v46, %s3553_s18  ;;  %2495 = vrot.lane.b32.xlu0 %v2459_v50, %s3552_s19  ;;  %s3465_s19 = scalar_lea.sflag [#allocation3], %s272_s8 }
 0x2f3   : > { %2430 = vrot.lane.b32.xlu1 %v2384_v46, %s3546_s21  ;;  %2500 = vrot.lane.b32.xlu0 %v2459_v50, %s3553_s18 }
 0x2f7   : > { %2435 = vrot.lane.b32.xlu1 %v2384_v46, %s3545_s17  ;;  %2505 = vrot.lane.b32.xlu0 %v2459_v50, %s3546_s21 }
 0x2fb   : > { %2440 = vrot.lane.b32.xlu1 %v2384_v46, %s3554_s23  ;;  %2510 = vrot.lane.b32.xlu0 %v2459_v50, %s3545_s17  ;;  %s1727_s17 = sshll.u32 %s2705_s28, 8  ;;  %s2641_s28 = smov [#allocation2]  }
 0x2fc   : > { %s3463_s14 = scalar_lea.hbm %s3513_s7, %s1727_s17 }
 0x2ff   : > { %2445 = vrot.lane.b32.xlu1 %v2384_v46, %s3555_s29  ;;  %2515 = vrot.lane.b32.xlu0 %v2459_v50, %s3554_s23  ;;  %s2562_s23 = sshll.u32 %s2641_s28, 4  ;;  %s2563_s23 = int_to_ptr.vmem [resolvable:$false] %s2562_s23 }
 0x303   : > { %2450 = vrot.lane.b32.xlu1 %v2384_v46, %s3556_s22  ;;  %2520 = vrot.lane.b32.xlu0 %v2459_v50, %s3555_s29  ;;  %s2564_s29 = scalar_lea.vmem %s2563_s23, 512 }
 0x307   : > { %2455 = vrot.lane.b32.xlu1 %v2384_v46, %s3557_s20  ;;  %2525 = vrot.lane.b32.xlu0 %v2459_v50, %s3556_s22 }
 0x30b   : > { %1418 = vperm.xlu1 %2383, %v290_v53   ;;  %2530 = vrot.lane.b32.xlu0 %v2459_v50, %s3557_s20  ;;  %s1696_s20 = sshll.u32 %s272_s8, 4 }
 0x30c   : > { %s274_s21 = scalar_lea.vmem [#allocation2], %s1696_s20 }
 0x30d   : > { %s1630_s13 = sshll.u32 %s274_s21, 4  ;;  %s3458_s13 = int_to_ptr.vmem [resolvable:$true] %s1630_s13 }
 0x30e   : > { %s2558_s18 = scalar_lea.vmem %s3458_s13, 256  ;;  %p2565_p0 = scmp.lt.s32.totalorder %s3458_s13, %s2563_s23 }
 0x30f   : > { %1423 = vperm.xlu0 %2382, %v291_v43   ;;  %p2559_p11 = scmp.ne.s32.totalorder %s3458_s13, %s2558_s18  ;;  %p2566_p1 = scmp.lt.s32.totalorder %s2564_s29, %s2558_s18 }
 0x311   : > { %p2560_p12 = pnand %p2559_p11, %p2722_p5  ;;  %p2567_p2 = por %p2566_p1, %p2565_p0 }
 0x313   : > { %p2561_p13 = pneg %p2560_p12 }
 0x315   : > { %p2568_p3 = pnand %p2567_p2, %p2561_p13 }
 0x341   : > { %v2386_v6 = vpop.permute.xlu1 %2385 }
 0x342   : > { %v2388_v58 = vunpack.i.h.bf16 %v2386_v6  ;;  %v2387_v54 = vunpack.i.l.bf16 %v2386_v6 }
 0x344   : > { %v1214_v60 = vsel %vm450_vm0, %v2387_v54, %v2388_v58 }
 0x345   : > { %v2391_v55 = vpop.permute.xlu1 %2390  ;;  %v2461_v56 = vpop.permute.xlu0 %2460 }
 0x346   : > { %v2463_v57 = vunpack.i.h.bf16 %v2461_v56  ;;  %v2462_v9 = vunpack.i.l.bf16 %v2461_v56  ;;  %v2393_v7 = vunpack.i.h.bf16 %v2391_v55  ;;  %v2392_v59 = vunpack.i.l.bf16 %v2391_v55 }
 0x348   : > { %v1924_v61 = vpack.c.bf16 %v2463_v57, %v2388_v58  ;;  %v1215_v62 = vsel %vm450_vm0, %v2462_v9, %v2463_v57  ;;  %v1228_v3 = vsel %vm457_vm1, %v2392_v59, %v2393_v7  ;;  %vm3558_vm0 = vcmask 941056  }
 0x349   : > { %v1926_v63 = vpack.c.bf16 %v1215_v62, %v1214_v60  ;;  %v2396_v18 = vpop.permute.xlu1 %2395  ;;  %v2466_v0 = vpop.permute.xlu0 %2465 }
 0x34a   : > { %v2468_v1 = vunpack.i.h.bf16 %v2466_v0  ;;  %v2467_v2 = vunpack.i.l.bf16 %v2466_v0  ;;  %1925 = vmatprep.subr.bf16.mxu1 %v1924_v61  ;;  %v2398_v4 = vunpack.i.h.bf16 %v2396_v18  ;;  %v2397_v5 = vunpack.i.l.bf16 %v2396_v18 }
 0x34b   : > { %1927 = vmatpush1.bf16.msra.mxu1 %v1926_v63 }
 0x34c   : > { %v1928_v8 = vpack.c.bf16 %v2468_v1, %v2393_v7  ;;  %v1229_v10 = vsel %vm457_vm1, %v2467_v2, %v2468_v1  ;;  %v1242_v17 = vsel %vm464_vm2, %v2397_v5, %v2398_v4  ;;  %vm3559_vm1 = vmmov %vm3558_vm0 }
 0x34d   : > { %v1930_v11 = vpack.c.bf16 %v1229_v10, %v1228_v3  ;;  %v2401_v12 = vpop.permute.xlu1 %2400  ;;  %v2471_v13 = vpop.permute.xlu0 %2470 }
 0x34e   : > { %v2473_v23 = vunpack.i.h.bf16 %v2471_v13  ;;  %v2472_v14 = vunpack.i.l.bf16 %v2471_v13  ;;  %1929 = vmatprep.subr.bf16.mxu1 %v1928_v8  ;;  %v2403_v15 = vunpack.i.h.bf16 %v2401_v12  ;;  %v2402_v16 = vunpack.i.l.bf16 %v2401_v12 }
 0x34f   : > { %1931 = vmatpush1.bf16.msra.mxu1 %v1930_v11 }
 0x350   : > { %v1932_v19 = vpack.c.bf16 %v2473_v23, %v2398_v4  ;;  %v1243_v20 = vsel %vm464_vm2, %v2472_v14, %v2473_v23  ;;  %v1256_v27 = vsel %vm471_vm3, %v2402_v16, %v2403_v15  ;;  %vm3560_vm2 = vcmask 932864  }
 0x351   : > { %v1934_v21 = vpack.c.bf16 %v1243_v20, %v1242_v17  ;;  %v2406_v22 = vpop.permute.xlu1 %2405  ;;  %v2476_v24 = vpop.permute.xlu0 %2475 }
 0x352   : > { %v2478_v25 = vunpack.i.h.bf16 %v2476_v24  ;;  %v2477_v26 = vunpack.i.l.bf16 %v2476_v24  ;;  %1933 = vmatprep.subr.bf16.mxu1 %v1932_v19  ;;  %v2408_v28 = vunpack.i.h.bf16 %v2406_v22  ;;  %v2407_v29 = vunpack.i.l.bf16 %v2406_v22 }
 0x353   : > { %1935 = vmatpush1.bf16.msra.mxu1 %v1934_v21 }
 0x354   : > { %v1936_v30 = vpack.c.bf16 %v2478_v25, %v2403_v15  ;;  %v1257_v31 = vsel %vm471_vm3, %v2477_v26, %v2478_v25  ;;  %v1270_v39 = vsel %vm478_vm4, %v2407_v29, %v2408_v28  ;;  %vm3561_vm3 = vmmov %vm3560_vm2 }
 0x355   : > { %v1938_v32 = vpack.c.bf16 %v1257_v31, %v1256_v27  ;;  %v2411_v33 = vpop.permute.xlu1 %2410  ;;  %v2481_v34 = vpop.permute.xlu0 %2480 }
 0x356   : > { %v2483_v35 = vunpack.i.h.bf16 %v2481_v34  ;;  %v2482_v36 = vunpack.i.l.bf16 %v2481_v34  ;;  %1937 = vmatprep.subr.bf16.mxu1 %v1936_v30  ;;  %v2413_v37 = vunpack.i.h.bf16 %v2411_v33  ;;  %v2412_v38 = vunpack.i.l.bf16 %v2411_v33 }
 0x357   : > { %1939 = vmatpush1.bf16.msra.mxu1 %v1938_v32 }
 0x358   : > { %v1940_v40 = vpack.c.bf16 %v2483_v35, %v2408_v28  ;;  %v1271_v41 = vsel %vm478_vm4, %v2482_v36, %v2483_v35  ;;  %v1284_v48 = vsel %vm485_vm5, %v2412_v38, %v2413_v37  ;;  %vm3562_vm4 = vcmask 924672  }
 0x359   : > { %v1942_v42 = vpack.c.bf16 %v1271_v41, %v1270_v39  ;;  %v2416_v44 = vpop.permute.xlu1 %2415  ;;  %v2486_v45 = vpop.permute.xlu0 %2485 }
 0x35a   : > { %v2488_v46 = vunpack.i.h.bf16 %v2486_v45  ;;  %v2487_v47 = vunpack.i.l.bf16 %v2486_v45  ;;  %1941 = vmatprep.subr.bf16.mxu1 %v1940_v40  ;;  %v2418_v49 = vunpack.i.h.bf16 %v2416_v44  ;;  %v2417_v50 = vunpack.i.l.bf16 %v2416_v44 }
 0x35b   : > { %1943 = vmatpush1.bf16.msra.mxu1 %v1942_v42 }
 0x35c   : > { %v1944_v51 = vpack.c.bf16 %v2488_v46, %v2413_v37  ;;  %v1285_v52 = vsel %vm485_vm5, %v2487_v47, %v2488_v46  ;;  %v1298_v57 = vsel %vm492_vm6, %v2417_v50, %v2418_v49  ;;  %vm3563_vm5 = vmmov %vm3562_vm4 }
 0x35d   : > { %v1946_v53 = vpack.c.bf16 %v1285_v52, %v1284_v48  ;;  %v2421_v43 = vpop.permute.xlu1 %2420  ;;  %v2491_v6 = vpop.permute.xlu0 %2490 }
 0x35e   : > { %v2493_v58 = vunpack.i.h.bf16 %v2491_v6  ;;  %v2492_v54 = vunpack.i.l.bf16 %v2491_v6  ;;  %1945 = vmatprep.subr.bf16.mxu1 %v1944_v51  ;;  %v2423_v55 = vunpack.i.h.bf16 %v2421_v43  ;;  %v2422_v56 = vunpack.i.l.bf16 %v2421_v43 }
 0x35f   : > { %1947 = vmatpush1.bf16.msra.mxu1 %v1946_v53 }
 0x360   : > { %v1948_v9 = vpack.c.bf16 %v2493_v58, %v2418_v49  ;;  %v1299_v7 = vsel %vm492_vm6, %v2492_v54, %v2493_v58  ;;  %v1312_v18 = vsel %vm499_vm7, %v2422_v56, %v2423_v55  ;;  %vm1534_vm6 = vcmask 1044480  }
 0x361   : > { %v1950_v59 = vpack.c.bf16 %v1299_v7, %v1298_v57  ;;  %v2426_v60 = vpop.permute.xlu1 %2425  ;;  %v2496_v61 = vpop.permute.xlu0 %2495 }
 0x362   : > { %v2498_v62 = vunpack.i.h.bf16 %v2496_v61  ;;  %v2497_v63 = vunpack.i.l.bf16 %v2496_v61  ;;  %1949 = vmatprep.subr.bf16.mxu1 %v1948_v9  ;;  %v2428_v0 = vunpack.i.h.bf16 %v2426_v60  ;;  %v2427_v1 = vunpack.i.l.bf16 %v2426_v60 }
 0x363   : > { %1951 = vmatpush1.bf16.msra.mxu1 %v1950_v59 }
 0x364   : > { %v1952_v2 = vpack.c.bf16 %v2498_v62, %v2423_v55  ;;  %v1313_v3 = vsel %vm499_vm7, %v2497_v63, %v2498_v62  ;;  %v1326_v23 = vsel %vm506_vm8, %v2427_v1, %v2428_v0  ;;  %vm2640_vm7 = vmmov 1  }
 0x365   : > { %v1954_v4 = vpack.c.bf16 %v1313_v3, %v1312_v18  ;;  %v2431_v5 = vpop.permute.xlu1 %2430  ;;  %v2501_v8 = vpop.permute.xlu0 %2500 }
 0x366   : > { %v2503_v10 = vunpack.i.h.bf16 %v2501_v8  ;;  %v2502_v11 = vunpack.i.l.bf16 %v2501_v8  ;;  %1953 = vmatprep.subr.bf16.mxu1 %v1952_v2  ;;  %v2433_v12 = vunpack.i.h.bf16 %v2431_v5  ;;  %v2432_v13 = vunpack.i.l.bf16 %v2431_v5 }
 0x367   : > { %1955 = vmatpush1.bf16.msra.mxu1 %v1954_v4 }
 0x368   : > { %v1956_v14 = vpack.c.bf16 %v2503_v10, %v2428_v0  ;;  %v1327_v15 = vsel %vm506_vm8, %v2502_v11, %v2503_v10  ;;  %v1340_v22 = vsel %vm513_vm9, %v2432_v13, %v2433_v12  ;;  %v420_v10 = vld [vmem:[%s3512_s6] sm:$0xff]  ;;  %v421_v11 = vld [vmem:[%s3512_s6 + $0x8] sm:$0xff]  ;;  %vm2016_vm8 = vmpackc.low %vm1534_vm6, %vm2640_vm7 }
 0x369   : > { %v1958_v16 = vpack.c.bf16 %v1327_v15, %v1326_v23  ;;  %v2436_v17 = vpop.permute.xlu1 %2435  ;;  %v2506_v19 = vpop.permute.xlu0 %2505  ;;  %v286_v13 = vld [vmem:[%s3509_s3] sm:$0xff]  ;;  %v1985_v23 = vpack.c.bf16 %v421_v11, %v420_v10  ;;  %v2639_v15 = vmov 0.0|0.0  }
 0x36a   : > { %v2508_v20 = vunpack.i.h.bf16 %v2506_v19  ;;  %v2507_v21 = vunpack.i.l.bf16 %v2506_v19  ;;  %1957 = vmatprep.subr.bf16.mxu1 %v1956_v14  ;;  %v2438_v24 = vunpack.i.h.bf16 %v2436_v17  ;;  %v2437_v25 = vunpack.i.l.bf16 %v2436_v17  ;;  %v289_v14 = vld [vmem:[%s3509_s3 + $0x18] sm:$0xff]  ;;  %v288_v19 = vld [vmem:[%s3509_s3 + $0x10] sm:$0xff] }
 0x36b   : > { %1959 = vmatpush1.bf16.msra.mxu1 %v1958_v16  ;;  %v422_v16 = vld [vmem:[%s3512_s6 + $0x10] sm:$0xff]  ;;  %v423_v17 = vld [vmem:[%s3512_s6 + $0x18] sm:$0xff] }
 0x36c   : > { %v1960_v26 = vpack.c.bf16 %v2508_v20, %v2433_v12  ;;  %v1341_v27 = vsel %vm513_vm9, %v2507_v21, %v2508_v20  ;;  %v1354_v35 = vsel %vm520_vm10, %v2437_v25, %v2438_v24  ;;  %v1988_v20 = vpack.c.bf16 %v423_v17, %v422_v16  ;;  %v424_v21 = vld [vmem:[%s3512_s6 + $0x20] sm:$0xff]  ;;  %v426_v25 = vld [vmem:[%s3512_s6 + $0x30] sm:$0xff] }
 0x36d   : > { %v1962_v28 = vpack.c.bf16 %v1341_v27, %v1340_v22  ;;  %v2441_v29 = vpop.permute.xlu1 %2440  ;;  %v2511_v30 = vpop.permute.xlu0 %2510  ;;  %v425_v22 = vld [vmem:[%s3512_s6 + $0x28] sm:$0xff]  ;;  %vm1527_vm9 = vcmask 367616  }
 0x36e   : > { %v2513_v31 = vunpack.i.h.bf16 %v2511_v30  ;;  %v2512_v32 = vunpack.i.l.bf16 %v2511_v30  ;;  %1961 = vmatprep.subr.bf16.mxu1 %v1960_v26  ;;  %v2443_v33 = vunpack.i.h.bf16 %v2441_v29  ;;  %v2442_v34 = vunpack.i.l.bf16 %v2441_v29  ;;  %v427_v26 = vld [vmem:[%s3512_s6 + $0x38] sm:$0xff]  ;;  %v429_v29 = vld [vmem:[%s3512_s6 + $0x48] sm:$0xff] }
 0x36f   : > { %1963 = vmatpush1.bf16.msra.mxu1 %v1962_v28  ;;  %v1994_v27 = vpack.c.bf16 %v427_v26, %v426_v25  ;;  %v428_v28 = vld [vmem:[%s3512_s6 + $0x40] sm:$0xff] }
 0x370   : > { %v1964_v36 = vpack.c.bf16 %v2513_v31, %v2438_v24  ;;  %v1355_v37 = vsel %vm520_vm10, %v2512_v32, %v2513_v31  ;;  %v1368_v44 = vsel %vm527_vm11, %v2442_v34, %v2443_v33  ;;  %v1991_v24 = vpack.c.bf16 %v425_v22, %v424_v21  ;;  %v430_v31 = vld [vmem:[%s3512_s6 + $0x50] sm:$0xff]  ;;  %v431_v32 = vld [vmem:[%s3512_s6 + $0x58] sm:$0xff]  ;;  %v432_v34 = vld [vmem:[%s3512_s6 + $0x60] sm:$0xff] }
 0x371   : > { %v1966_v38 = vpack.c.bf16 %v1355_v37, %v1354_v35  ;;  %v2446_v39 = vpop.permute.xlu1 %2445  ;;  %v2516_v40 = vpop.permute.xlu0 %2515  ;;  %v1997_v30 = vpack.c.bf16 %v429_v29, %v428_v28  ;;  %v433_v35 = vld [vmem:[%s3512_s6 + $0x68] sm:$0xff]  ;;  %v434_v37 = vld [vmem:[%s3512_s6 + $0x70] sm:$0xff] }
 0x372   : > { %v2518_v41 = vunpack.i.h.bf16 %v2516_v40  ;;  %v2517_v42 = vunpack.i.l.bf16 %v2516_v40  ;;  %1965 = vmatprep.subr.bf16.mxu1 %v1964_v36  ;;  %v2448_v45 = vunpack.i.h.bf16 %v2446_v39  ;;  %v2447_v46 = vunpack.i.l.bf16 %v2446_v39  ;;  %v436_v40 = vld [vmem:[%s3512_s6 + $0x80] sm:$0xff] }
 0x373   : > { %1967 = vmatpush1.bf16.msra.mxu1 %v1966_v38  ;;  %v2003_v36 = vpack.c.bf16 %v433_v35, %v432_v34  ;;  %v435_v38 = vld [vmem:[%s3512_s6 + $0x78] sm:$0xff] }
 0x374   : > { %v1968_v47 = vpack.c.bf16 %v2518_v41, %v2443_v33  ;;  %v1369_v48 = vsel %vm527_vm11, %v2517_v42, %v2518_v41  ;;  %v1382_v58 = vsel %vm3558_vm0, %v2447_v46, %v2448_v45  ;;  %v2000_v33 = vpack.c.bf16 %v431_v32, %v430_v31  ;;  %v437_v41 = vld [vmem:[%s3512_s6 + $0x88] sm:$0xff] }
 0x375   : > { %v1970_v49 = vpack.c.bf16 %v1369_v48, %v1368_v44  ;;  %v2451_v50 = vpop.permute.xlu1 %2450  ;;  %v2521_v51 = vpop.permute.xlu0 %2520  ;;  %v2006_v39 = vpack.c.bf16 %v435_v38, %v434_v37  ;;  %v2009_v42 = vpack.c.bf16 %v437_v41, %v436_v40  ;;  %v438_v44 = vld [vmem:[%s3512_s6 + $0x90] sm:$0xff]  ;;  %v441_v48 = vld [vmem:[%s3512_s6 + $0xa8] sm:$0x1f] }
 0x376   : > { %v2523_v52 = vunpack.i.h.bf16 %v2521_v51  ;;  %v2522_v53 = vunpack.i.l.bf16 %v2521_v51  ;;  %1969 = vmatprep.subr.bf16.mxu1 %v1968_v47  ;;  %v2453_v43 = vunpack.i.h.bf16 %v2451_v50  ;;  %v2452_v6 = vunpack.i.l.bf16 %v2451_v50  ;;  %v440_v47 = vld [vmem:[%s3512_s6 + $0xa0] sm:$0xff] }
 0x377   : > { %1971 = vmatpush1.bf16.msra.mxu1 %v1970_v49  ;;  %v2015_v49 = vpack.c.bf16 %v441_v48, %v440_v47 }
 0x378   : > { %v1972_v54 = vpack.c.bf16 %v2523_v52, %v2448_v45  ;;  %v1383_v55 = vsel %vm3559_vm1, %v2522_v53, %v2523_v52  ;;  %v1396_v60 = vsel %vm3560_vm2, %v2452_v6, %v2453_v43  ;;  %v439_v45 = vld [vmem:[%s3512_s6 + $0x98] sm:$0xff] }
 0x379   : > { %v1974_v56 = vpack.c.bf16 %v1383_v55, %v1382_v58  ;;  %v2456_v57 = vpop.permute.xlu1 %2455  ;;  %v2526_v9 = vpop.permute.xlu0 %2525  ;;  %v2012_v46 = vpack.c.bf16 %v439_v45, %v438_v44 }
 0x37a   : > { %v2528_v7 = vunpack.i.h.bf16 %v2526_v9  ;;  %v2527_v59 = vunpack.i.l.bf16 %v2526_v9  ;;  %1973 = vmatprep.subr.bf16.mxu1 %v1972_v54  ;;  %v2458_v61 = vunpack.i.h.bf16 %v2456_v57  ;;  %v2457_v62 = vunpack.i.l.bf16 %v2456_v57 }
 0x37b   : > { %1975 = vmatpush1.bf16.msra.mxu1 %v1974_v56 }
 0x37c   : > { %v1976_v63 = vpack.c.bf16 %v2528_v7, %v2453_v43  ;;  %v1397_v18 = vsel %vm3561_vm3, %v2527_v59, %v2528_v7  ;;  %v1410_v4 = vsel %vm3562_vm4, %v2457_v62, %v2458_v61 }
 0x37d   : > { %v1978_v0 = vpack.c.bf16 %v1397_v18, %v1396_v60  ;;  %v2531_v1 = vpop.permute.xlu0 %2530 }
 0x37e   : > { %v2533_v2 = vunpack.i.h.bf16 %v2531_v1  ;;  %v2532_v3 = vunpack.i.l.bf16 %v2531_v1  ;;  %1977 = vmatprep.subr.bf16.mxu1 %v1976_v63 }
 0x37f   : > { %1979 = vmatpush1.bf16.msra.mxu1 %v1978_v0 }
 0x380   : > { %v1980_v5 = vpack.c.bf16 %v2533_v2, %v2458_v61  ;;  %v1411_v8 = vsel %vm3563_vm5, %v2532_v3, %v2533_v2 }
 0x381   : > { %v1982_v12 = vpack.c.bf16 %v1411_v8, %v1410_v4 }
 0x382   : > { %1981 = vmatprep.subr.bf16.mxu1 %v1980_v5 }
 0x383   : > { %1983 = vmatpush1.bf16.msra.mxu1 %v1982_v12 }
 0x384   : > { %1984 = vmatprep.subr.bf16.mxu1 %v2639_v15 }
 0x386   : > { %1491 = vmatmul.mubr.f32.vlgmr.msra.gmra.mrb[4].mxu1 %v286_v13 }
 0x387   : > { %1496 = vmatprep.mubr.f32.mxu1 %v289_v14  ;;  %1986 = vmatpush1.bf16.msra.mxu1 %v1985_v23 }
 0x388   : > { %1987 = vmatprep.subr.bf16.mxu1 %v2639_v15 }
 0x38a   : > { %1497 = vmatmul.mubr.f32.gmra.mrb[6].mxu1 %v288_v19  ;;  %v1419_v50 = vpop.permute.xlu1 %1418 }
 0x38b   : > { %1989 = vmatpush1.bf16.msra.mxu1 %v1988_v20 }
 0x38c   : > { %1990 = vmatprep.subr.bf16.mxu1 %v2639_v15 }
 0x38e   : > { %v1424_v58 = vpop.permute.xlu0 %1423 }
 0x38f   : > { %1992 = vmatpush1.bf16.msra.mxu1 %v1991_v24 }
 0x390   : > { %1993 = vmatprep.subr.bf16.mxu1 %v2639_v15 }
 0x393   : > { %1995 = vmatpush1.bf16.msra.mxu1 %v1994_v27 }
 0x394   : > { %1996 = vmatprep.subr.bf16.mxu1 %v2639_v15 }
 0x397   : > { %1998 = vmatpush1.bf16.msra.mxu1 %v1997_v30 }
 0x398   : > { %1999 = vmatprep.subr.bf16.mxu1 %v2639_v15 }
 0x39b   : > { %2001 = vmatpush1.bf16.msra.mxu1 %v2000_v33 }
 0x39c   : > { %2002 = vmatprep.subr.bf16.mxu1 %v2639_v15 }
 0x39f   : > { %2004 = vmatpush1.bf16.msra.mxu1 %v2003_v36 }
 0x3a0   : > { %2005 = vmatprep.subr.bf16.mxu1 %v2639_v15 }
 0x3a3   : > { %2007 = vmatpush1.bf16.msra.mxu1 %v2006_v39 }
 0x3a4   : > { %2008 = vmatprep.subr.bf16.mxu1 %v2639_v15 }
 0x3a7   : > { %2010 = vmatpush1.bf16.msra.mxu1 %v2009_v42 }
 0x3a8   : > { %2011 = vmatprep.subr.bf16.mxu1 %v2639_v15 }
 0x3ab   : > { %2013 = vmatpush1.bf16.msra.mxu1 %v2012_v46 }
 0x3ac   : > { %2014 = vmatprep.subr.bf16.mxu1 %v2639_v15 }
 0x3af   : > { %2017 = vmatpush1.bf16.msk.msra.mxu1 %vm2016_vm8, %v2015_v49 }
 0x459   : > { %v1492_v51 = vpop.f32.mrb[4].mxu1 }
 0x45a   : > { %v1493_v52 = vadd.f32 %v1492_v51, %v1419_v50  ;;  %v1494_v53 = vpop.f32.mrb[5].mxu1 }
 0x45b   : > { %v1495_v43 = vadd.f32 %v1494_v53, %v1419_v50 }
 0x45c   : > { %v1507_v6 = vmin.f32 %v1493_v52, 0.0  ;;  %vm1503_vm11 = vcmp.gt.f32.partialorder %v1493_v52, 0.0 }
 0x45d   : > { %v1508_v54 = vmin.f32 %v1495_v43, 0.0  ;;  %v1498_v55 = vpop.f32.mrb[6].mxu1  ;;  %vm1504_vm10 = vcmp.gt.f32.partialorder %v1495_v43, 0.0 }
 0x45e   : > { %v1511_v56 = vmul.f32 1.442695, %v1507_v6  ;;  %v1499_v57 = vadd.f32 %v1498_v55, %v1424_v58  ;;  %v1500_v9 = vpop.f32.mrb[7].mxu1 }
 0x45f   : > { %v1513_v7 = vmul.f32 1.442695, %v1508_v54  ;;  %v1501_v59 = vadd.f32 %v1500_v9, %v1424_v58 }
 0x460   : > { %2550 = vpow2.f32 %v1511_v56  ;;  %v1509_v60 = vmin.f32 %v1499_v57, 0.0  ;;  %vm1505_vm13 = vcmp.gt.f32.partialorder %v1499_v57, 0.0 }
 0x461   : > { %2552 = vpow2.f32 %v1513_v7  ;;  %v1510_v61 = vmin.f32 %v1501_v59, 0.0  ;;  %vm1506_vm12 = vcmp.gt.f32.partialorder %v1501_v59, 0.0 }
 0x462   : > { %v1515_v62 = vmul.f32 1.442695, %v1509_v60 }
 0x463   : > { %v1517_v63 = vmul.f32 1.442695, %v1510_v61 }
 0x464   : > { %2554 = vpow2.f32 %v1515_v62 }
 0x465   : > { %2556 = vpow2.f32 %v1517_v63 }
 0x46a   : > { %v2551_v18 = vpop.eup %2550 }
 0x46b   : > { %v2553_v0 = vpop.eup %2552  ;;  %v1714_v1 = vadd.f32 -1.0, %v2551_v18 }
 0x46c   : > { %v1715_v2 = vadd.f32 -1.0, %v2553_v0 }
 0x46d   : > { %v1523_v8 = vsel %vm1503_vm11, %v1493_v52, %v1714_v1 }
 0x46e   : > { %v2555_v3 = vpop.eup %2554  ;;  %v1524_v4 = vsel %vm1504_vm10, %v1495_v43, %v1715_v2 }
 0x46f   : > { %v2557_v5 = vpop.eup %2556  ;;  %1719 = vmatprep.mubr.msk.f32.mxu1 %vm1527_vm9, %v1524_v4  ;;  %v1716_v10 = vadd.f32 -1.0, %v2555_v3 }
 0x470   : > { %1603 = vmatmul.mubr.f32.vlgmr.msra.gmra.mrb[8].mxu1 %v1523_v8  ;;  %v1717_v11 = vadd.f32 -1.0, %v2557_v5 }
 0x471   : > { %v1525_v13 = vsel %vm1505_vm13, %v1499_v57, %v1716_v10 }
 0x472   : > { %v1526_v12 = vsel %vm1506_vm12, %v1501_v59, %v1717_v11 }
 0x473   : > { %1720 = vmatprep.mubr.msk.f32.mxu1 %vm1527_vm9, %v1526_v12 }
 0x474   : > { %1608 = vmatmul.mubr.f32.gmra.mrb[10].mxu1 %v1525_v13 }
 0x543   : > { %v1604_v23 = vpop.f32.mrb[8].mxu1 }
 0x544   : > { %1614 = vst.msk [vmem:[%s274_s21] sm:$0xff] %vm1613_vm14, %v1604_v23  ;;  %v1606_v14 = vpop.f32.mrb[9].mxu1 }
 0x547   : > { %v1609_v15 = vpop.f32.mrb[10].mxu1 }
 0x548   : > { %1615 = vst.msk [vmem:[%s274_s21 + $0x8] sm:$0xff] %vm1613_vm14, %v1609_v15  ;;  %v1611_v16 = vpop.f32.mrb[11].mxu1 }
 0x549   : > { %2571 = shalt.err (!%p2568_p3)
}
 0x54a   : > { %s2572_s22 = scalar_lea.hbm %s3463_s14, 256  ;;  %s2576_s20 = scalar_lea.hbm %s3513_s7, 512 }
 0x54b   : > { %p2573_p4 = scmp.ne.s32.totalorder %s3463_s14, %s2572_s22  ;;  %p2577_p9 = scmp.lt.u32.totalorder %s3463_s14, %s3513_s7 }
 0x54c   : > { %p2578_p10 = scmp.lt.u32.totalorder %s2576_s20, %s2572_s22  ;;  %p2580_p12 = scmp.lt.u32.totalorder %s2572_s22, %s3463_s14 }
 0x54d   : > { %p2574_p7 = pnand %p2573_p4, %p2722_p5 }
 0x54e   : > { %p2579_p11 = por %p2578_p10, %p2577_p9 }
 0x54f   : > { %p2575_p8 = pneg %p2574_p7 }
 0x550   : > { %p2581_p13 = por %p2580_p12, %p2579_p11 }
 0x552   : > { %p2582_p0 = pnand %p2581_p13, %p2575_p8 }
 0x554   : > { %2585 = shalt.err (!%p2582_p0)
}
 0x555   : > { %s2642_s15 = smov 128   ;;  %s2643_s16 = smov 8  }
 0x556   : > { %2022 = dma.vmem_to_hbm [thread:$0]  (%p2722_p5), %s3458_s13, 256, %s3463_s14, %s3465_s19, %s2642_s15, %s2642_s15, %s2643_s16  }
 0x557 PF: > { %p2028_p1 = scmp.ge.s32.totalorder %s2620_s27, 2  ;;  %s1645_s18 = sand.u32 1, %s2608_s24  }
 0x558   : > { %s1646_s28 = scalar_lea.sflag [#allocation3], %s1645_s18 }
 0x559   : > { %p2025_p2 = pnand %p2028_p1, %p2726_p6 }
 0x55b   : > { %2603 = dma.done.wait (!%p2025_p2), %s1646_s28, 256  }
 0x55c   : > { %2605 = vsyncadd (!%p2025_p2), %s1646_s28, 4294967040  ;;  %p17_p3 = scmp.ge.s32.totalorder %s2709_s30, 4   ;;  %s3564_s24 = smov %s2612_s25 }
 0x55d   : > { %s3565_s25 = smov %s2616_s26  ;;  %s3566_s26 = smov %s2720_s10 }
 0x55e   : > { %s3567_s27 = smov %s2709_s30  ;;  %19 = sbr.rel (!%p17_p3) target bundleno = 3 (0x3), region = 86 }
 0x565   :  { %1651 = vsyncpa [#allocation3], 1 }
 0x566   :  { %1653 = vsyncpa [#allocation3 + $0x1], 1 }

</bundles_post_ra>
